<compile_context>
chip_gen: v5e
topology: v5e:2x2
jax: 0.10.0
libtpu: 0.0.40
codegen_flags: <defaults>
</compile_context>

<pallas_src>
import math
from functools import partial

import jax
import jax.numpy as jnp
from jax.experimental import pallas as pl
from jax.experimental.pallas import tpu as pltpu

LANE = 128


def _round_up(v, m):
    return ((v + m - 1) // m) * m


# --------------------------- fused Pallas kernel --------------------------- #

def _fused_forward_kernel(betas_ref, adj_hbm_ref, x_ref, w1_ref, b1_ref,
                          ws_ref, gs_ref, bs_ref, wf_ref, bf_ref,
                          o_ref, adj_vmem, adj_sem, *,
                          n_layers, alpha, n_chunks, chunk, unroll):
    # Kick off the adjacency HBM->VMEM DMA in row chunks.  It overlaps with the
    # first linear + ReLU, and later chunks overlap layer-0 aggregation on the
    # chunks that already arrived.
    for j in range(n_chunks):
        pltpu.make_async_copy(adj_hbm_ref.at[pl.ds(j * chunk, chunk), :],
                              adj_vmem.at[pl.ds(j * chunk, chunk), :],
                              adj_sem.at[j]).start()

    # first_layer + ReLU (dropout == identity at inference).
    h0 = jnp.dot(x_ref[...], w1_ref[...], preferred_element_type=jnp.float32)
    x0 = jnp.maximum(h0 + b1_ref[...], 0.0)          # x_init, f32 (first_to_skip)
    h = x0.astype(jnp.bfloat16)                      # running activation (bf16)

    def layer_tail(i, h_bf, agg):
        beta = betas_ref[i]
        hc = (1.0 - alpha) * agg + alpha * x0                     # initial residual
        # identity-mapping branch; W pre-scaled by beta_i in the wrapper
        hw = jnp.dot(hc.astype(jnp.bfloat16), ws_ref[i],
                     preferred_element_type=jnp.float32)
        out = (1.0 - beta) * hc + hw + h_bf.astype(jnp.float32)   # + MODEL.RESIDUAL
        # folded eval-BatchNorm (running stats 0/1) + conv bias: out*g' + b'
        out = out * gs_ref[i] + bs_ref[i]
        # ELU (selected act_type option)
        out = jnp.where(out > 0.0, out, jnp.exp(jnp.minimum(out, 0.0)) - 1.0)
        return out.astype(jnp.bfloat16)

    # Layer 0: per-chunk 'add' aggregation, consuming each adj chunk as it lands.
    agg_parts = []
    for j in range(n_chunks):
        pltpu.make_async_copy(adj_hbm_ref.at[pl.ds(j * chunk, chunk), :],
                              adj_vmem.at[pl.ds(j * chunk, chunk), :],
                              adj_sem.at[j]).wait()
        agg_parts.append(jnp.dot(adj_vmem[pl.ds(j * chunk, chunk), :], h,
                                 preferred_element_type=jnp.float32))
    agg0 = agg_parts[0] if n_chunks == 1 else jnp.concatenate(agg_parts, axis=0)
    h = layer_tail(0, h, agg0)

    adj = adj_vmem[...]                              # fully resident from here on

    def layer_body(i, h_bf):
        agg = jnp.dot(adj, h_bf, preferred_element_type=jnp.float32)
        return layer_tail(i, h_bf, agg)

    if unroll:                                       # shallow: static unroll
        for i in range(1, n_layers):
            h = layer_body(i, h)
    else:                                            # deep: bound vreg live ranges
        h = jax.lax.fori_loop(1, n_layers, layer_body, h)

    # dense_comb == 'last' -> final_fc on last layer output.
    y = jnp.dot(h, wf_ref[...], preferred_element_type=jnp.float32)
    o_ref[...] = (y + bf_ref[...]).astype(o_ref.dtype)


# ------------------------------ wrapper ------------------------------ #

def model_forward(x, adj_t, params, *, n_layers, lambd, alpha=0.1, bn_eps=1e-5):
    n, c_in = x.shape
    c = params['w1'].shape[1]
    c_out = params['wf'].shape[1]
    n_p = _round_up(n, LANE)        # lane-dense adj last dim / sublane-aligned rows
    cin_p = _round_up(c_in, LANE)
    c_p = _round_up(c, LANE)        # NOTE: if real C >= 256, 256-wide tiles map
    cout_p = _round_up(c_out, LANE)  # better to the v6e/v7x 256x256 MXU.

    betas = tuple(float(math.log(lambd / (i + 1) + 1.0)) for i in range(n_layers))
    inv_std = 1.0 / math.sqrt(1.0 + bn_eps)

    def pad2(a, rows, cols):
        return jnp.pad(a, ((0, rows - a.shape[0]), (0, cols - a.shape[1])))

    # pad to TPU-friendly shapes; cast MXU operands to bf16 (f32 accumulation)
    x_p = pad2(x, n_p, cin_p).astype(jnp.bfloat16)
    adj_b = pad2(adj_t, n_p, n_p).astype(jnp.bfloat16)   # 0/1 exact in bf16
    w1_b = pad2(params['w1'], cin_p, c_p).astype(jnp.bfloat16)
    b1_p = pad2(params['b1'], 1, c_p)
    wf_b = pad2(params['wf'], c_p, cout_p).astype(jnp.bfloat16)
    bf_p = pad2(params['bf'], 1, cout_p)

    ws, gs, bs = [], [], []
    for i in range(n_layers):
        g_fold = params[f'gamma_{i}'] * inv_std                             # gamma / sqrt(var+eps)
        b_fold = params[f'bnb_{i}'] + betas[i] * params[f'b_{i}'] * g_fold  # bnb + beta*b*g'
        ws.append(pad2(betas[i] * params[f'w_{i}'], c_p, c_p).astype(jnp.bfloat16))
        gs.append(pad2(g_fold, 1, c_p))
        bs.append(pad2(b_fold, 1, c_p))
    ws = jnp.stack(ws)                       # (L, c_p, c_p) bf16 (pre-scaled by beta)
    gs = jnp.stack(gs)                       # (L, 1, c_p)   f32
    bs = jnp.stack(bs)                       # (L, 1, c_p)   f32
    betas_arr = jnp.asarray(betas, jnp.float32)

    # adj DMA chunking (chunk always divides n_p; multiple of 16 sublanes)
    n_chunks = 2 if n_p <= 256 else 8
    chunk = n_p // n_chunks
    unroll = n_layers <= 4

    # VMEM budget (adj is single-buffered: manual DMA into one scratch copy)
    vmem_need = (n_p * n_p * 2                                   # adj scratch
                 + n_p * cin_p * 2 + cin_p * c_p * 2             # x, W1
                 + n_layers * c_p * c_p * 2 + c_p * cout_p * 2   # stacked W, Wf
                 + (2 * n_layers + 2) * 8 * c_p * 4              # g'/b'/b1/bf
                 + n_p * cout_p * 4                              # output
                 + 6 * n_p * c_p * 4)                            # live activations
    vmem_limit = int(min(max(vmem_need + (8 << 20), 32 << 20), 112 << 20))

    flops = int(2 * n_p * cin_p * c_p
                + n_layers * (2 * n_p * n_p * c_p + 2 * n_p * c_p * c_p)
                + 2 * n_p * c_p * cout_p)
    bytes_accessed = int(adj_b.size * 2 + x_p.size * 2 + w1_b.size * 2
                         + wf_b.size * 2 + ws.size * 2
                         + (gs.size + bs.size + b1_p.size + bf_p.size) * 4
                         + n_p * cout_p * 4)

    out = pl.pallas_call(
        partial(_fused_forward_kernel, n_layers=n_layers, alpha=alpha,
                n_chunks=n_chunks, chunk=chunk, unroll=unroll),
        out_shape=jax.ShapeDtypeStruct((n_p, cout_p), jnp.float32),
        in_specs=[
            pl.BlockSpec(memory_space=pltpu.MemorySpace.SMEM),   # betas (L,)
            pl.BlockSpec(memory_space=pl.ANY),                   # adj_t (HBM, manual DMA)
            pl.BlockSpec(memory_space=pltpu.MemorySpace.VMEM),   # x
            pl.BlockSpec(memory_space=pltpu.MemorySpace.VMEM),   # W1
            pl.BlockSpec(memory_space=pltpu.MemorySpace.VMEM),   # b1
            pl.BlockSpec(memory_space=pltpu.MemorySpace.VMEM),   # stacked beta*W
            pl.BlockSpec(memory_space=pltpu.MemorySpace.VMEM),   # folded BN scale
            pl.BlockSpec(memory_space=pltpu.MemorySpace.VMEM),   # folded bias
            pl.BlockSpec(memory_space=pltpu.MemorySpace.VMEM),   # Wf
            pl.BlockSpec(memory_space=pltpu.MemorySpace.VMEM),   # bf
        ],
        out_specs=pl.BlockSpec(memory_space=pltpu.MemorySpace.VMEM),
        scratch_shapes=[pltpu.VMEM((n_p, n_p), jnp.bfloat16),    # adj resident copy
                        pltpu.SemaphoreType.DMA((n_chunks,))],
        compiler_params=pltpu.CompilerParams(vmem_limit_bytes=vmem_limit),
        cost_estimate=pl.CostEstimate(flops=flops,
                                      transcendentals=int(n_layers * n_p * c_p),
                                      bytes_accessed=bytes_accessed),
    )(betas_arr, adj_b, x_p, w1_b, b1_p, ws, gs, bs, wf_b, bf_p)
    return out[:n, :c_out]


# --------------------------- pure-JAX reference --------------------------- #

def reference_forward(x, adj_t, params, *, n_layers, lambd, alpha=0.1, bn_eps=1e-5):
    inv_std = 1.0 / math.sqrt(1.0 + bn_eps)
    h = jnp.maximum(x @ params['w1'] + params['b1'], 0.0)
    x0 = h
    for i in range(n_layers):
        beta = math.log(lambd / (i + 1) + 1.0)
        agg = adj_t @ h
        hc = (1.0 - alpha) * agg + alpha * x0
        out = (1.0 - beta) * hc + beta * (hc @ params[f'w_{i}'] + params[f'b_{i}']) + h
        out = out * (params[f'gamma_{i}'] * inv_std) + params[f'bnb_{i}']
        out = jnp.where(out > 0.0, out, jnp.exp(jnp.minimum(out, 0.0)) - 1.0)
        h = out
    return h @ params['wf'] + params['bf']


# --------------------------- main --------------------------- #

if __name__ == "__main__":
    N, C_IN, HIDDEN, HEADS, C_OUT = 32, 16, 16, 2, 8
    LAMBD = 0.5
    C = HIDDEN * HEADS
    E = 64

    def glorot(key, shape):
        lim = math.sqrt(6.0 / (shape[0] + shape[1]))
        return jax.random.uniform(key, shape, jnp.float32, -lim, lim)

    def make_params(key, c_in, c, c_out, n_layers):
        ks = jax.random.split(key, 2 + 2 * n_layers)
        p = {
            'w1': glorot(ks[0], (c_in, c)),
            'b1': jnp.zeros((1, c), jnp.float32),
            'wf': glorot(ks[1], (c, c_out)),
            'bf': jnp.zeros((1, c_out), jnp.float32),
        }
        for i in range(n_layers):
            p[f'w_{i}'] = glorot(ks[2 + 2 * i], (c, c))
            p[f'b_{i}'] = jnp.zeros((1, c), jnp.float32)
            p[f'gamma_{i}'] = jax.random.uniform(ks[3 + 2 * i], (1, c), jnp.float32, 0.0, 1.0)
            p[f'bnb_{i}'] = jnp.zeros((1, c), jnp.float32)
        return p

    root = jax.random.PRNGKey(0)
    kx, ke1, ke2, kp2, kp6 = jax.random.split(root, 5)

    # inputs
    x = jax.random.normal(kx, (N, C_IN), jnp.float32)
    src = jax.random.randint(ke1, (E,), 0, N)
    dst = jax.random.randint(ke2, (E,), 0, N)
    # dense adjacency + add_remaining_self_loops(value=1.0), then transpose (adj.t())
    adj = jnp.zeros((N, N), jnp.float32).at[src, dst].set(1.0)
    adj = adj.at[jnp.arange(N), jnp.arange(N)].set(1.0)
    adj_t = adj.T

    # 2 layers -> statically unrolled path; 6 layers -> lax.fori_loop path
    for n_layers, pkey in ((2, kp2), (6, kp6)):
        params = make_params(pkey, C_IN, C, C_OUT, n_layers)
        fwd = jax.jit(partial(model_forward, n_layers=n_layers, lambd=LAMBD))
        out = jax.block_until_ready(fwd(x, adj_t, params))
        ref = reference_forward(x, adj_t, params, n_layers=n_layers, lambd=LAMBD)
        assert out.shape == (N, C_OUT) and out.dtype == jnp.float32
        assert bool(jnp.all(jnp.isfinite(out)))
        err = float(jnp.max(jnp.abs(out - ref))) / (float(jnp.max(jnp.abs(ref))) + 1e-6)
        assert err < 0.1, f"mismatch vs reference (n_layers={n_layers}): {err}"
    print("KERNEL_OK")
</pallas_src>

<mosaic_0001>
module attributes {stable_mosaic.version = 11 : i64} {
  func.func @_fused_forward_kernel(%arg0: memref<2xf32, #tpu.memory_space<smem>>, %arg1: memref<128x128xbf16, #tpu.memory_space<any>>, %arg2: memref<128x128xbf16, #tpu.memory_space<vmem>>, %arg3: memref<128x128xbf16, #tpu.memory_space<vmem>>, %arg4: memref<1x128xf32, #tpu.memory_space<vmem>>, %arg5: memref<2x128x128xbf16, #tpu.memory_space<vmem>>, %arg6: memref<2x1x128xf32, #tpu.memory_space<vmem>>, %arg7: memref<2x1x128xf32, #tpu.memory_space<vmem>>, %arg8: memref<128x128xbf16, #tpu.memory_space<vmem>>, %arg9: memref<1x128xf32, #tpu.memory_space<vmem>>, %arg10: memref<128x128xf32, #tpu.memory_space<vmem>>, %arg11: memref<128x128xbf16, #tpu.memory_space<vmem>>, %arg12: memref<2x!tpu.dma_semaphore, #tpu.memory_space<semaphore_mem>>) attributes {dimension_semantics = [], scalar_prefetch = 0 : i64, scratch_operands = 2 : i64, tpu.core_type = #tpu.core_type<tc>} {
    %c0_i32 = arith.constant 0 : i32
    %c0_i32_0 = arith.constant 0 : i32
    %c0_i32_1 = arith.constant 0 : i32
    %0 = tpu.memref_slice %arg1[%c0_i32_0, %c0_i32_1] : memref<128x128xbf16, #tpu.memory_space<any>> -> memref<64x128xbf16, #tpu.memory_space<any>>
    %c0_i32_2 = arith.constant 0 : i32
    %c0_i32_3 = arith.constant 0 : i32
    %1 = tpu.memref_slice %arg11[%c0_i32_2, %c0_i32_3] : memref<128x128xbf16, #tpu.memory_space<vmem>> -> memref<64x128xbf16, #tpu.memory_space<vmem>>
    %2 = tpu.memref_slice %arg12[%c0_i32] : memref<2x!tpu.dma_semaphore, #tpu.memory_space<semaphore_mem>> -> memref<1x!tpu.dma_semaphore, #tpu.memory_space<semaphore_mem>>
    %3 = tpu.memref_squeeze %2 : memref<1x!tpu.dma_semaphore, #tpu.memory_space<semaphore_mem>> -> memref<!tpu.dma_semaphore, #tpu.memory_space<semaphore_mem>>
    tpu.enqueue_dma source(%0 : memref<64x128xbf16, #tpu.memory_space<any>>) target(%1 : memref<64x128xbf16, #tpu.memory_space<vmem>>) target_semaphore(%3 : memref<!tpu.dma_semaphore, #tpu.memory_space<semaphore_mem>>)
    %c1_i32 = arith.constant 1 : i32
    %c64_i32 = arith.constant 64 : i32
    %c0_i32_4 = arith.constant 0 : i32
    %4 = tpu.memref_slice %arg1[%c64_i32, %c0_i32_4] : memref<128x128xbf16, #tpu.memory_space<any>> -> memref<64x128xbf16, #tpu.memory_space<any>>
    %c64_i32_5 = arith.constant 64 : i32
    %c0_i32_6 = arith.constant 0 : i32
    %5 = tpu.memref_slice %arg11[%c64_i32_5, %c0_i32_6] : memref<128x128xbf16, #tpu.memory_space<vmem>> -> memref<64x128xbf16, #tpu.memory_space<vmem>>
    %6 = tpu.memref_slice %arg12[%c1_i32] : memref<2x!tpu.dma_semaphore, #tpu.memory_space<semaphore_mem>> -> memref<1x!tpu.dma_semaphore, #tpu.memory_space<semaphore_mem>>
    %7 = tpu.memref_squeeze %6 : memref<1x!tpu.dma_semaphore, #tpu.memory_space<semaphore_mem>> -> memref<!tpu.dma_semaphore, #tpu.memory_space<semaphore_mem>>
    tpu.enqueue_dma source(%4 : memref<64x128xbf16, #tpu.memory_space<any>>) target(%5 : memref<64x128xbf16, #tpu.memory_space<vmem>>) target_semaphore(%7 : memref<!tpu.dma_semaphore, #tpu.memory_space<semaphore_mem>>)
    %c0 = arith.constant 0 : index
    %c0_7 = arith.constant 0 : index
    %8 = vector.load %arg2[%c0, %c0_7] : memref<128x128xbf16, #tpu.memory_space<vmem>>, vector<128x128xbf16>
    %c0_8 = arith.constant 0 : index
    %c0_9 = arith.constant 0 : index
    %9 = vector.load %arg3[%c0_8, %c0_9] : memref<128x128xbf16, #tpu.memory_space<vmem>>, vector<128x128xbf16>
    %cst = arith.constant dense<0.000000e+00> : vector<128x128xf32>
    %10 = tpu.matmul %8, %9, %cst {dimension_numbers = #tpu.dot_dimension_numbers<[1], [0], [0], [1], [0, 0, 1, 1], [], []>} : vector<128x128xbf16>, vector<128x128xbf16>, vector<128x128xf32> -> vector<128x128xf32>
    %c0_10 = arith.constant 0 : index
    %c0_11 = arith.constant 0 : index
    %11 = vector.load %arg4[%c0_10, %c0_11] : memref<1x128xf32, #tpu.memory_space<vmem>>, vector<1x128xf32>
    %12 = vector.broadcast %11 : vector<1x128xf32> to vector<128x128xf32>
    %13 = arith.addf %10, %12 : vector<128x128xf32>
    %cst_12 = arith.constant 0.000000e+00 : f32
    %14 = vector.broadcast %cst_12 : f32 to vector<128x128xf32>
    %15 = arith.maximumf %13, %14 : vector<128x128xf32>
    %16 = arith.truncf %15 : vector<128x128xf32> to vector<128x128xbf16>
    %c0_i32_13 = arith.constant 0 : i32
    %c0_i32_14 = arith.constant 0 : i32
    %c0_i32_15 = arith.constant 0 : i32
    %17 = tpu.memref_slice %arg1[%c0_i32_14, %c0_i32_15] : memref<128x128xbf16, #tpu.memory_space<any>> -> memref<64x128xbf16, #tpu.memory_space<any>>
    %c0_i32_16 = arith.constant 0 : i32
    %c0_i32_17 = arith.constant 0 : i32
    %18 = tpu.memref_slice %arg11[%c0_i32_16, %c0_i32_17] : memref<128x128xbf16, #tpu.memory_space<vmem>> -> memref<64x128xbf16, #tpu.memory_space<vmem>>
    %19 = tpu.memref_slice %arg12[%c0_i32_13] : memref<2x!tpu.dma_semaphore, #tpu.memory_space<semaphore_mem>> -> memref<1x!tpu.dma_semaphore, #tpu.memory_space<semaphore_mem>>
    %20 = tpu.memref_squeeze %19 : memref<1x!tpu.dma_semaphore, #tpu.memory_space<semaphore_mem>> -> memref<!tpu.dma_semaphore, #tpu.memory_space<semaphore_mem>>
    tpu.wait_dma2 semaphore(%20 : memref<!tpu.dma_semaphore, #tpu.memory_space<semaphore_mem>>) src(%17 : memref<64x128xbf16, #tpu.memory_space<any>>) dst(%18 : memref<64x128xbf16, #tpu.memory_space<vmem>>)
    %c0_18 = arith.constant 0 : index
    %c0_19 = arith.constant 0 : index
    %21 = vector.load %arg11[%c0_18, %c0_19] : memref<128x128xbf16, #tpu.memory_space<vmem>>, vector<64x128xbf16>
    %cst_20 = arith.constant dense<0.000000e+00> : vector<64x128xf32>
    %22 = tpu.matmul %21, %16, %cst_20 {dimension_numbers = #tpu.dot_dimension_numbers<[1], [0], [0], [1], [0, 0, 1, 1], [], []>} : vector<64x128xbf16>, vector<128x128xbf16>, vector<64x128xf32> -> vector<64x128xf32>
    %c1_i32_21 = arith.constant 1 : i32
    %c64_i32_22 = arith.constant 64 : i32
    %c0_i32_23 = arith.constant 0 : i32
    %23 = tpu.memref_slice %arg1[%c64_i32_22, %c0_i32_23] : memref<128x128xbf16, #tpu.memory_space<any>> -> memref<64x128xbf16, #tpu.memory_space<any>>
    %c64_i32_24 = arith.constant 64 : i32
    %c0_i32_25 = arith.constant 0 : i32
    %24 = tpu.memref_slice %arg11[%c64_i32_24, %c0_i32_25] : memref<128x128xbf16, #tpu.memory_space<vmem>> -> memref<64x128xbf16, #tpu.memory_space<vmem>>
    %25 = tpu.memref_slice %arg12[%c1_i32_21] : memref<2x!tpu.dma_semaphore, #tpu.memory_space<semaphore_mem>> -> memref<1x!tpu.dma_semaphore, #tpu.memory_space<semaphore_mem>>
    %26 = tpu.memref_squeeze %25 : memref<1x!tpu.dma_semaphore, #tpu.memory_space<semaphore_mem>> -> memref<!tpu.dma_semaphore, #tpu.memory_space<semaphore_mem>>
    tpu.wait_dma2 semaphore(%26 : memref<!tpu.dma_semaphore, #tpu.memory_space<semaphore_mem>>) src(%23 : memref<64x128xbf16, #tpu.memory_space<any>>) dst(%24 : memref<64x128xbf16, #tpu.memory_space<vmem>>)
    %c64 = arith.constant 64 : index
    %c0_26 = arith.constant 0 : index
    %27 = vector.load %arg11[%c64, %c0_26] : memref<128x128xbf16, #tpu.memory_space<vmem>>, vector<64x128xbf16>
    %cst_27 = arith.constant dense<0.000000e+00> : vector<64x128xf32>
    %28 = tpu.matmul %27, %16, %cst_27 {dimension_numbers = #tpu.dot_dimension_numbers<[1], [0], [0], [1], [0, 0, 1, 1], [], []>} : vector<64x128xbf16>, vector<128x128xbf16>, vector<64x128xf32> -> vector<64x128xf32>
    %29 = tpu.concatenate %22, %28 in 0 : vector<64x128xf32>, vector<64x128xf32> -> vector<128x128xf32>
    %c0_28 = arith.constant 0 : index
    %30 = memref.load %arg0[%c0_28] : memref<2xf32, #tpu.memory_space<smem>>
    %cst_29 = arith.constant 0.899999976 : f32
    %31 = vector.broadcast %cst_29 : f32 to vector<128x128xf32>
    %32 = arith.mulf %31, %29 : vector<128x128xf32>
    %cst_30 = arith.constant 1.000000e-01 : f32
    %33 = vector.broadcast %cst_30 : f32 to vector<128x128xf32>
    %34 = arith.mulf %33, %15 : vector<128x128xf32>
    %35 = arith.addf %32, %34 : vector<128x128xf32>
    %36 = arith.truncf %35 : vector<128x128xf32> to vector<128x128xbf16>
    %c0_31 = arith.constant 0 : index
    %c0_32 = arith.constant 0 : index
    %c0_33 = arith.constant 0 : index
    %37 = vector.load %arg5[%c0_31, %c0_32, %c0_33] : memref<2x128x128xbf16, #tpu.memory_space<vmem>>, vector<1x128x128xbf16>
    %38 = vector.shape_cast %37 : vector<1x128x128xbf16> to vector<128x128xbf16>
    %cst_34 = arith.constant dense<0.000000e+00> : vector<128x128xf32>
    %39 = tpu.matmul %36, %38, %cst_34 {dimension_numbers = #tpu.dot_dimension_numbers<[1], [0], [0], [1], [0, 0, 1, 1], [], []>} : vector<128x128xbf16>, vector<128x128xbf16>, vector<128x128xf32> -> vector<128x128xf32>
    %cst_35 = arith.constant 1.000000e+00 : f32
    %40 = arith.subf %cst_35, %30 : f32
    %41 = vector.broadcast %40 : f32 to vector<128x128xf32>
    %42 = arith.mulf %41, %35 : vector<128x128xf32>
    %43 = arith.addf %42, %39 : vector<128x128xf32>
    %44 = arith.extf %16 : vector<128x128xbf16> to vector<128x128xf32>
    %45 = arith.addf %43, %44 : vector<128x128xf32>
    %c0_36 = arith.constant 0 : index
    %c0_37 = arith.constant 0 : index
    %c0_38 = arith.constant 0 : index
    %46 = vector.load %arg6[%c0_36, %c0_37, %c0_38] : memref<2x1x128xf32, #tpu.memory_space<vmem>>, vector<1x1x128xf32>
    %47 = vector.shape_cast %46 : vector<1x1x128xf32> to vector<1x128xf32>
    %48 = vector.broadcast %47 : vector<1x128xf32> to vector<128x128xf32>
    %49 = arith.mulf %45, %48 : vector<128x128xf32>
    %c0_39 = arith.constant 0 : index
    %c0_40 = arith.constant 0 : index
    %c0_41 = arith.constant 0 : index
    %50 = vector.load %arg7[%c0_39, %c0_40, %c0_41] : memref<2x1x128xf32, #tpu.memory_space<vmem>>, vector<1x1x128xf32>
    %51 = vector.shape_cast %50 : vector<1x1x128xf32> to vector<1x128xf32>
    %52 = vector.broadcast %51 : vector<1x128xf32> to vector<128x128xf32>
    %53 = arith.addf %49, %52 : vector<128x128xf32>
    %cst_42 = arith.constant 0.000000e+00 : f32
    %54 = vector.broadcast %cst_42 : f32 to vector<128x128xf32>
    %55 = arith.cmpf ogt, %53, %54 : vector<128x128xf32>
    %cst_43 = arith.constant 0.000000e+00 : f32
    %56 = vector.broadcast %cst_43 : f32 to vector<128x128xf32>
    %57 = arith.minimumf %53, %56 : vector<128x128xf32>
    %58 = math.exp %57 : vector<128x128xf32>
    %cst_44 = arith.constant 1.000000e+00 : f32
    %59 = vector.broadcast %cst_44 : f32 to vector<128x128xf32>
    %60 = arith.subf %58, %59 : vector<128x128xf32>
    %61 = arith.select %55, %53, %60 : vector<128x128xi1>, vector<128x128xf32>
    %62 = arith.truncf %61 : vector<128x128xf32> to vector<128x128xbf16>
    %c0_45 = arith.constant 0 : index
    %c0_46 = arith.constant 0 : index
    %63 = vector.load %arg11[%c0_45, %c0_46] : memref<128x128xbf16, #tpu.memory_space<vmem>>, vector<128x128xbf16>
    %cst_47 = arith.constant dense<0.000000e+00> : vector<128x128xf32>
    %64 = tpu.matmul %63, %62, %cst_47 {dimension_numbers = #tpu.dot_dimension_numbers<[1], [0], [0], [1], [0, 0, 1, 1], [], []>} : vector<128x128xbf16>, vector<128x128xbf16>, vector<128x128xf32> -> vector<128x128xf32>
    %c1 = arith.constant 1 : index
    %65 = memref.load %arg0[%c1] : memref<2xf32, #tpu.memory_space<smem>>
    %cst_48 = arith.constant 0.899999976 : f32
    %66 = vector.broadcast %cst_48 : f32 to vector<128x128xf32>
    %67 = arith.mulf %66, %64 : vector<128x128xf32>
    %cst_49 = arith.constant 1.000000e-01 : f32
    %68 = vector.broadcast %cst_49 : f32 to vector<128x128xf32>
    %69 = arith.mulf %68, %15 : vector<128x128xf32>
    %70 = arith.addf %67, %69 : vector<128x128xf32>
    %71 = arith.truncf %70 : vector<128x128xf32> to vector<128x128xbf16>
    %c1_50 = arith.constant 1 : index
    %c0_51 = arith.constant 0 : index
    %c0_52 = arith.constant 0 : index
    %72 = vector.load %arg5[%c1_50, %c0_51, %c0_52] : memref<2x128x128xbf16, #tpu.memory_space<vmem>>, vector<1x128x128xbf16>
    %73 = vector.shape_cast %72 : vector<1x128x128xbf16> to vector<128x128xbf16>
    %cst_53 = arith.constant dense<0.000000e+00> : vector<128x128xf32>
    %74 = tpu.matmul %71, %73, %cst_53 {dimension_numbers = #tpu.dot_dimension_numbers<[1], [0], [0], [1], [0, 0, 1, 1], [], []>} : vector<128x128xbf16>, vector<128x128xbf16>, vector<128x128xf32> -> vector<128x128xf32>
    %cst_54 = arith.constant 1.000000e+00 : f32
    %75 = arith.subf %cst_54, %65 : f32
    %76 = vector.broadcast %75 : f32 to vector<128x128xf32>
    %77 = arith.mulf %76, %70 : vector<128x128xf32>
    %78 = arith.addf %77, %74 : vector<128x128xf32>
    %79 = arith.extf %62 : vector<128x128xbf16> to vector<128x128xf32>
    %80 = arith.addf %78, %79 : vector<128x128xf32>
    %c1_55 = arith.constant 1 : index
    %c0_56 = arith.constant 0 : index
    %c0_57 = arith.constant 0 : index
    %81 = vector.load %arg6[%c1_55, %c0_56, %c0_57] : memref<2x1x128xf32, #tpu.memory_space<vmem>>, vector<1x1x128xf32>
    %82 = vector.shape_cast %81 : vector<1x1x128xf32> to vector<1x128xf32>
    %83 = vector.broadcast %82 : vector<1x128xf32> to vector<128x128xf32>
    %84 = arith.mulf %80, %83 : vector<128x128xf32>
    %c1_58 = arith.constant 1 : index
    %c0_59 = arith.constant 0 : index
    %c0_60 = arith.constant 0 : index
    %85 = vector.load %arg7[%c1_58, %c0_59, %c0_60] : memref<2x1x128xf32, #tpu.memory_space<vmem>>, vector<1x1x128xf32>
    %86 = vector.shape_cast %85 : vector<1x1x128xf32> to vector<1x128xf32>
    %87 = vector.broadcast %86 : vector<1x128xf32> to vector<128x128xf32>
    %88 = arith.addf %84, %87 : vector<128x128xf32>
    %cst_61 = arith.constant 0.000000e+00 : f32
    %89 = vector.broadcast %cst_61 : f32 to vector<128x128xf32>
    %90 = arith.cmpf ogt, %88, %89 : vector<128x128xf32>
    %cst_62 = arith.constant 0.000000e+00 : f32
    %91 = vector.broadcast %cst_62 : f32 to vector<128x128xf32>
    %92 = arith.minimumf %88, %91 : vector<128x128xf32>
    %93 = math.exp %92 : vector<128x128xf32>
    %cst_63 = arith.constant 1.000000e+00 : f32
    %94 = vector.broadcast %cst_63 : f32 to vector<128x128xf32>
    %95 = arith.subf %93, %94 : vector<128x128xf32>
    %96 = arith.select %90, %88, %95 : vector<128x128xi1>, vector<128x128xf32>
    %97 = arith.truncf %96 : vector<128x128xf32> to vector<128x128xbf16>
    %c0_64 = arith.constant 0 : index
    %c0_65 = arith.constant 0 : index
    %98 = vector.load %arg8[%c0_64, %c0_65] : memref<128x128xbf16, #tpu.memory_space<vmem>>, vector<128x128xbf16>
    %cst_66 = arith.constant dense<0.000000e+00> : vector<128x128xf32>
    %99 = tpu.matmul %97, %98, %cst_66 {dimension_numbers = #tpu.dot_dimension_numbers<[1], [0], [0], [1], [0, 0, 1, 1], [], []>} : vector<128x128xbf16>, vector<128x128xbf16>, vector<128x128xf32> -> vector<128x128xf32>
    %c0_67 = arith.constant 0 : index
    %c0_68 = arith.constant 0 : index
    %100 = vector.load %arg9[%c0_67, %c0_68] : memref<1x128xf32, #tpu.memory_space<vmem>>, vector<1x128xf32>
    %101 = vector.broadcast %100 : vector<1x128xf32> to vector<128x128xf32>
    %102 = arith.addf %99, %101 : vector<128x128xf32>
    %c0_69 = arith.constant 0 : index
    %c0_70 = arith.constant 0 : index
    %103 = vector.load %arg10[%c0_69, %c0_70] : memref<128x128xf32, #tpu.memory_space<vmem>>, vector<128x128xf32>
    tpu.vector_store %arg10[%c0_69, %c0_70], %102 {strides = array<i32>} : memref<128x128xf32, #tpu.memory_space<vmem>>, vector<128x128xf32>,
    return
  }
}

</mosaic_0001>

<bundles_post_ra>
// kernel: model_forward.1
= control target key start
LH: loop header
LB: loop body
LE: loop exit
PB: predicated region body
PF: predicated region fallthrough
CT: control target
= control target key end

     0   :  { %15 = vsyncpa [#allocation5], 0  ;;  %s1943_s16 = smov [#allocation4]   ;;  %s2747_s0 = inlined_call_operand.vmem [shape: f32[2], index: 0, kind: input, shape index: {}]   ;;  %s2748_s1 = inlined_call_operand.vmem [shape: bf16[128,128], index: 1, kind: input, shape index: {}]   ;;  %s2749_s2 = inlined_call_operand.vmem [shape: bf16[128,128], index: 2, kind: input, shape index: {}]   ;;  %s2750_s3 = inlined_call_operand.vmem [shape: bf16[128,128], index: 3, kind: input, shape index: {}]   ;;  %s2751_s4 = inlined_call_operand.vmem [shape: f32[1,128], index: 4, kind: input, shape index: {}]   ;;  %s2752_s5 = inlined_call_operand.vmem [shape: bf16[2,128,128], index: 5, kind: input, shape index: {}]   ;;  %s2753_s6 = inlined_call_operand.vmem [shape: f32[2,1,128], index: 6, kind: input, shape index: {}]   ;;  %s2754_s7 = inlined_call_operand.vmem [shape: f32[2,1,128], index: 7, kind: input, shape index: {}]   ;;  %s2755_s8 = inlined_call_operand.vmem [shape: bf16[128,128], index: 8, kind: input, shape index: {}]   ;;  %s2756_s9 = inlined_call_operand.vmem [shape: f32[1,128], index: 9, kind: input, shape index: {}]   ;;  %s2757_s10 = inlined_call_operand.vmem [shape: f32[128,128], index: 10, kind: output, shape index: {}]  }
   0x1   :  { %s21_s15 = sshll.u32 %s2747_s0, 4  ;;  %s22_s15 = int_to_ptr.vmem [resolvable:$true] %s21_s15 }
   0x2   :  { %24 = dma.vmem_to_smem %s22_s15, 16, %s1943_s16, [#allocation5]  }
   0x3   :  { %1937 = dma.done.wait [#allocation5], 16  }
   0x4   :  { %1938 = vsyncadd [#allocation5], 4294967280 }
   0x5   :  { %45 = sfence }
   0x6   :  { %v56_v0 = vld [vmem:[%s2748_s1] sm:$0xff]  ;;  %v58_v1 = vld [vmem:[%s2748_s1 + $0x8] sm:$0xff]  ;;  %v60_v2 = vld [vmem:[%s2748_s1 + $0x10] sm:$0xff] }
   0x7   :  { %57 = vst [vmem:[#allocation2 + $0x30] sm:$0xff] %v56_v0  ;;  %v62_v3 = vld [vmem:[%s2748_s1 + $0x18] sm:$0xff] }
   0x8   :  { %59 = vst [vmem:[#allocation2] sm:$0xff] %v58_v1 }
   0x9   :  { %61 = vst [vmem:[#allocation2 + $0x18] sm:$0xff] %v60_v2 }
   0xa   :  { %63 = vst [vmem:[#allocation2 + $0x10] sm:$0xff] %v62_v3 }
   0xb   :  { %69 = vsyncadd [#allocation3], 512  ;;  %v1529_v4 = vld [vmem:[%s2748_s1 + $0x20] sm:$0xff]  ;;  %v1530_v5 = vld [vmem:[%s2748_s1 + $0x28] sm:$0xff] }
   0xc   :  { %84 = vst [vmem:[#allocation2 + $0x8] sm:$0xff] %v1529_v4  ;;  %v1531_v6 = vld [vmem:[%s2748_s1 + $0x30] sm:$0xff]  ;;  %v1532_v7 = vld [vmem:[%s2748_s1 + $0x38] sm:$0xff] }
   0xd   :  { %86 = vst [vmem:[#allocation2 + $0x20] sm:$0xff] %v1530_v5 }
   0xe   :  { %88 = vst [vmem:[#allocation2 + $0x28] sm:$0xff] %v1531_v6 }
   0xf   :  { %90 = vst [vmem:[#allocation2 + $0x38] sm:$0xff] %v1532_v7 }
  0x10   :  { %96 = vsyncadd [#allocation3 + $0x1], 512  ;;  %v1809_v8 = vld [vmem:[%s2750_s3 + $0x38] sm:$0xff]  ;;  %v1808_v9 = vld [vmem:[%s2750_s3 + $0x30] sm:$0xff] }
  0x11   :  { %229 = vmatpush.bf16.msra.mxu0 %v1809_v8  ;;  %1846 = vmatpush.bf16.msra.mxu3 %v1809_v8  ;;  %v1807_v10 = vld [vmem:[%s2750_s3 + $0x28] sm:$0xff]  ;;  %v1806_v11 = vld [vmem:[%s2750_s3 + $0x20] sm:$0xff]  ;;  %v1805_v12 = vld [vmem:[%s2750_s3 + $0x18] sm:$0xff] }
  0x12   :  { %v1804_v13 = vld [vmem:[%s2750_s3 + $0x10] sm:$0xff]  ;;  %v1803_v14 = vld [vmem:[%s2750_s3 + $0x8] sm:$0xff]  ;;  %v1802_v15 = vld [vmem:[%s2750_s3] sm:$0xff] }
  0x13   :  { %v1794_v16 = vld [vmem:[%s2749_s2] sm:$0xff]  ;;  %v1795_v18 = vld [vmem:[%s2749_s2 + $0x8] sm:$0xff]  ;;  %v1796_v20 = vld [vmem:[%s2749_s2 + $0x10] sm:$0xff] }
  0x14   :  { %v1798_v17 = vld [vmem:[%s2749_s2 + $0x20] sm:$0xff]  ;;  %v1799_v19 = vld [vmem:[%s2749_s2 + $0x28] sm:$0xff]  ;;  %v1800_v21 = vld [vmem:[%s2749_s2 + $0x30] sm:$0xff] }
  0x15   :  { %230 = vmatpush.bf16.msra.mxu0 %v1808_v9  ;;  %1847 = vmatpush.bf16.msra.mxu3 %v1808_v9  ;;  %v1797_v22 = vld [vmem:[%s2749_s2 + $0x18] sm:$0xff]  ;;  %v1855_v24 = vld [vmem:[%s2751_s4] ss:$0 sm:$0xff] }
  0x16   :  { %v1801_v23 = vld [vmem:[%s2749_s2 + $0x38] sm:$0xff] }
  0x19   :  { %231 = vmatpush.bf16.msra.mxu0 %v1807_v10  ;;  %1848 = vmatpush.bf16.msra.mxu3 %v1807_v10 }
  0x1d   :  { %232 = vmatpush.bf16.msra.mxu0 %v1806_v11  ;;  %1849 = vmatpush.bf16.msra.mxu3 %v1806_v11 }
  0x21   :  { %233 = vmatpush.bf16.msra.mxu0 %v1805_v12  ;;  %1850 = vmatpush.bf16.msra.mxu3 %v1805_v12 }
  0x25   :  { %234 = vmatpush.bf16.msra.mxu0 %v1804_v13  ;;  %1851 = vmatpush.bf16.msra.mxu3 %v1804_v13 }
  0x29   :  { %235 = vmatpush.bf16.msra.mxu0 %v1803_v14  ;;  %1852 = vmatpush.bf16.msra.mxu3 %v1803_v14 }
  0x2d   :  { %236 = vmatpush.bf16.msra.mxu0 %v1802_v15  ;;  %1853 = vmatpush.bf16.msra.mxu3 %v1802_v15 }
  0x30   :  { %237 = vmatmul.bf16.vlgmr.msra.gmra.mxu0 %v1794_v16  ;;  %257 = vmatmul.bf16.vlgmr.msra.gmra.mxu3 %v1798_v17 }
  0x40   :  { %242 = vmatmul.bf16.gmra.mxu0 %v1795_v18  ;;  %262 = vmatmul.bf16.gmra.mxu3 %v1799_v19 }
  0x50   :  { %247 = vmatmul.bf16.gmra.mxu0 %v1796_v20  ;;  %267 = vmatmul.bf16.gmra.mxu3 %v1800_v21 }
  0x60   :  { %252 = vmatmul.bf16.gmra.mxu0 %v1797_v22  ;;  %272 = vmatmul.bf16.gmra.mxu3 %v1801_v23 }
  0xad   :  { %v238_v25 = vpop.f32.mrf.mxu0 }
  0xae   :  { %v239_v26 = vadd.f32 %v1855_v24, %v238_v25 }
  0xb0   :  { %v2077_v27 = vmax.f32 %v239_v26, 0.0 }
  0xb2   :  { %v2081_v28 = vpack.c.bf16 %v2077_v27, %v2077_v27 }
  0xb3   :  { %v258_v29 = vpop.f32.mrf.mxu3 }
  0xb4   :  { %v259_v30 = vadd.f32 %v1855_v24, %v258_v29 }
  0xb5   :  { %v240_v31 = vpop.f32.mrf.mxu0 }
  0xb6   :  { %v2083_v32 = vmax.f32 %v259_v30, 0.0  ;;  %v241_v33 = vadd.f32 %v1855_v24, %v240_v31 }
  0xb8   :  { %v2087_v34 = vpack.c.bf16 %v2083_v32, %v2083_v32  ;;  %v2089_v35 = vmax.f32 %v241_v33, 0.0 }
  0xba   :  { %v2093_v36 = vpack.c.bf16 %v2089_v35, %v2089_v35 }
  0xbb   :  { %v260_v37 = vpop.f32.mrf.mxu3 }
  0xbc   :  { %v261_v38 = vadd.f32 %v1855_v24, %v260_v37 }
  0xbd   :  { %v243_v39 = vpop.f32.mrf.mxu0 }
  0xbe   :  { %v2095_v40 = vmax.f32 %v261_v38, 0.0  ;;  %v244_v41 = vadd.f32 %v1855_v24, %v243_v39 }
  0xc0   :  { %v2099_v42 = vpack.c.bf16 %v2095_v40, %v2095_v40  ;;  %v2101_v43 = vmax.f32 %v244_v41, 0.0 }
  0xc2   :  { %v2105_v44 = vpack.c.bf16 %v2101_v43, %v2101_v43 }
  0xc3   :  { %v263_v45 = vpop.f32.mrf.mxu3 }
  0xc4   :  { %v264_v46 = vadd.f32 %v1855_v24, %v263_v45 }
  0xc5   :  { %v245_v47 = vpop.f32.mrf.mxu0 }
  0xc6   :  { %v2107_v48 = vmax.f32 %v264_v46, 0.0  ;;  %v246_v49 = vadd.f32 %v1855_v24, %v245_v47 }
  0xc8   :  { %v2111_v50 = vpack.c.bf16 %v2107_v48, %v2107_v48  ;;  %v2113_v51 = vmax.f32 %v246_v49, 0.0 }
  0xca   :  { %v2117_v52 = vpack.c.bf16 %v2113_v51, %v2113_v51 }
  0xcb   :  { %v265_v53 = vpop.f32.mrf.mxu3 }
  0xcc   :  { %v266_v54 = vadd.f32 %v1855_v24, %v265_v53 }
  0xcd   :  { %v248_v55 = vpop.f32.mrf.mxu0 }
  0xce   :  { %v2119_v56 = vmax.f32 %v266_v54, 0.0  ;;  %v249_v57 = vadd.f32 %v1855_v24, %v248_v55 }
  0xd0   :  { %v2123_v58 = vpack.c.bf16 %v2119_v56, %v2119_v56  ;;  %v2125_v59 = vmax.f32 %v249_v57, 0.0 }
  0xd2   :  { %v2129_v60 = vpack.c.bf16 %v2125_v59, %v2125_v59 }
  0xd3   :  { %v268_v61 = vpop.f32.mrf.mxu3 }
  0xd4   :  { %v269_v62 = vadd.f32 %v1855_v24, %v268_v61 }
  0xd5   :  { %v250_v63 = vpop.f32.mrf.mxu0 }
  0xd6   :  { %v2131_v0 = vmax.f32 %v269_v62, 0.0  ;;  %v251_v1 = vadd.f32 %v1855_v24, %v250_v63 }
  0xd8   :  { %v2135_v2 = vpack.c.bf16 %v2131_v0, %v2131_v0  ;;  %v2137_v3 = vmax.f32 %v251_v1, 0.0 }
  0xda   :  { %v2141_v4 = vpack.c.bf16 %v2137_v3, %v2137_v3  ;;  %v374_v30 = vunpack.c.l.b16 %v2135_v2 }
  0xdb   :  { %v270_v5 = vpop.f32.mrf.mxu3 }
  0xdc   :  { %v271_v6 = vadd.f32 %v1855_v24, %v270_v5 }
  0xdd   :  { %v253_v7 = vpop.f32.mrf.mxu0 }
  0xde   :  { %v2143_v8 = vmax.f32 %v271_v6, 0.0  ;;  %v254_v9 = vadd.f32 %v1855_v24, %v253_v7 }
  0xe0   :  { %v2147_v10 = vpack.c.bf16 %v2143_v8, %v2143_v8  ;;  %v2149_v11 = vmax.f32 %v254_v9, 0.0 }
  0xe2   :  { %v2153_v12 = vpack.c.bf16 %v2149_v11, %v2149_v11  ;;  %v375_v31 = vunpack.c.l.b16 %v2147_v10 }
  0xe3   :  { %v273_v13 = vpop.f32.mrf.mxu3 }
  0xe4   :  { %v274_v14 = vadd.f32 %v1855_v24, %v273_v13 }
  0xe5   :  { %v255_v15 = vpop.f32.mrf.mxu0 }
  0xe6   :  { %v2155_v16 = vmax.f32 %v274_v14, 0.0  ;;  %v256_v17 = vadd.f32 %v1855_v24, %v255_v15 }
  0xe8   :  { %v2159_v18 = vpack.c.bf16 %v2155_v16, %v2155_v16  ;;  %v2161_v19 = vmax.f32 %v256_v17, 0.0 }
  0xea   :  { %v2165_v20 = vpack.c.bf16 %v2161_v19, %v2161_v19  ;;  %v376_v26 = vunpack.c.l.b16 %v2159_v18 }
  0xeb   :  { %v275_v21 = vpop.f32.mrf.mxu3 }
  0xec   :  { %v276_v22 = vadd.f32 %v1855_v24, %v275_v21 }
  0xee   :  { %v2167_v23 = vmax.f32 %v276_v22, 0.0 }
  0xf0   :  { %v2171_v25 = vpack.c.bf16 %v2167_v23, %v2167_v23 }
  0xf2   :  { %v377_v29 = vunpack.c.l.b16 %v2171_v25 }
  0xf3   :  { %1939 = dma.done.wait [#allocation3], 512 }
  0xf4   :  { %1940 = vsyncadd [#allocation3], 4294966784  ;;  %v385_v33 = vpack.c.b16 %v377_v29, %v376_v26  ;;  %v384_v37 = vpack.c.b16 %v375_v31, %v374_v30  ;;  %v372_v24 = vunpack.c.l.b16 %v2111_v50  ;;  %v373_v38 = vunpack.c.l.b16 %v2123_v58  ;;  %v1810_v7 = vld [vmem:[#allocation2 + $0x30] sm:$0xff]  ;;  %v1811_v9 = vld [vmem:[#allocation2] sm:$0xff] }
  0xf5   :  { %v370_v41 = vunpack.c.l.b16 %v2087_v34  ;;  %v371_v45 = vunpack.c.l.b16 %v2099_v42  ;;  %v368_v47 = vunpack.c.l.b16 %v2153_v12  ;;  %v369_v49 = vunpack.c.l.b16 %v2165_v20  ;;  %v1812_v13 = vld [vmem:[#allocation2 + $0x18] sm:$0xff]  ;;  %v1813_v14 = vld [vmem:[#allocation2 + $0x10] sm:$0xff] }
  0xf6   :  { %394 = vmatpush.bf16.msra.mxu1 %v385_v33  ;;  %v383_v39 = vpack.c.b16 %v373_v38, %v372_v24  ;;  %v366_v54 = vunpack.c.l.b16 %v2129_v60  ;;  %v367_v55 = vunpack.c.l.b16 %v2141_v4  ;;  %v364_v61 = vunpack.c.l.b16 %v2105_v44  ;;  %457 = vmatpush.bf16.msra.mxu2 %v385_v33 }
  0xf7   :  { %v382_v46 = vpack.c.b16 %v371_v45, %v370_v41  ;;  %v381_v53 = vpack.c.b16 %v369_v49, %v368_v47  ;;  %v365_v62 = vunpack.c.l.b16 %v2117_v52  ;;  %v362_v1 = vunpack.c.l.b16 %v2081_v28 }
  0xf8   :  { %v380_v57 = vpack.c.b16 %v367_v55, %v366_v54  ;;  %v363_v5 = vunpack.c.l.b16 %v2093_v36 }
  0xf9   :  { %v379_v63 = vpack.c.b16 %v365_v62, %v364_v61 }
  0xfa   :  { %395 = vmatpush.bf16.msra.mxu1 %v384_v37  ;;  %v378_v6 = vpack.c.b16 %v363_v5, %v362_v1 }
  0xfe   :  { %396 = vmatpush.bf16.msra.mxu1 %v383_v39 }
 0x102   :  { %397 = vmatpush.bf16.msra.mxu1 %v382_v46 }
 0x106   :  { %398 = vmatpush.bf16.msra.mxu1 %v381_v53 }
 0x10a   :  { %399 = vmatpush.bf16.msra.mxu1 %v380_v57 }
 0x10e   :  { %400 = vmatpush.bf16.msra.mxu1 %v379_v63 }
 0x112   :  { %401 = vmatpush.bf16.msra.mxu1 %v378_v6 }
 0x115   :  { %402 = vmatmul.bf16.vlgmr.msra.gmra.mxu1 %v1810_v7 }
 0x125   :  { %407 = vmatmul.bf16.gmra.mxu1 %v1811_v9 }
 0x135   :  { %412 = vmatmul.bf16.gmra.mxu1 %v1812_v13 }
 0x145   :  { %417 = vmatmul.bf16.gmra.mxu1 %v1813_v14 }
 0x192   :  { %v403_v15 = vpop.f32.mrf.mxu1 }
 0x19a   :  { %v405_v17 = vpop.f32.mrf.mxu1 }
 0x1a2   :  { %v408_v21 = vpop.f32.mrf.mxu1 }
 0x1aa   :  { %v410_v22 = vpop.f32.mrf.mxu1 }
 0x1b2   :  { %v413_v26 = vpop.f32.mrf.mxu1 }
 0x1ba   :  { %v415_v29 = vpop.f32.mrf.mxu1 }
 0x1c2   :  { %v418_v30 = vpop.f32.mrf.mxu1 }
 0x1ca   :  { %v420_v31 = vpop.f32.mrf.mxu1 }
 0x1cb   :  { %1941 = dma.done.wait [#allocation3 + $0x1], 512 }
 0x1cc   :  { %1942 = vsyncadd [#allocation3 + $0x1], 4294966784  ;;  %458 = vmatpush.bf16.msra.mxu2 %v384_v37  ;;  %v1825_v24 = vld [vmem:[%s2752_s5 + $0x38] sm:$0xff]  ;;  %v2192_v38 = vld [vmem:[#allocation2 + $0x8] sm:$0xff]  ;;  %v487_v47 = vmul.f32 0.9, %v403_v15 }
 0x1cd   :  { %607 = vmatpush.bf16.msrb.mxu3 %v1825_v24  ;;  %v1824_v33 = vld [vmem:[%s2752_s5 + $0x30] sm:$0xff]  ;;  %v1823_v37 = vld [vmem:[%s2752_s5 + $0x28] sm:$0xff]  ;;  %v1821_v41 = vld [vmem:[%s2752_s5 + $0x18] sm:$0xff]  ;;  %v488_v49 = vmul.f32 0.9, %v405_v17  ;;  %s486_s14 = sld [smem:[#allocation4]] }
 0x1ce   :  { %v2207_v45 = vld [vmem:[#allocation2 + $0x20] sm:$0xff]  ;;  %v2217_v54 = vmul.f32 0.1, %v2089_v35  ;;  %v1819_v55 = vld [vmem:[%s2752_s5 + $0x8] sm:$0xff]  ;;  %v490_v1 = vmul.f32 0.9, %v410_v22 }
 0x1cf   :  { %v1818_v62 = vld [vmem:[%s2752_s5] sm:$0xff]  ;;  %v2230_v35 = vld [vmem:[#allocation2 + $0x28] sm:$0xff]  ;;  %v2234_v5 = vmul.f32 0.1, %v2101_v43  ;;  %v2247_v14 = vld [vmem:[#allocation2 + $0x38] sm:$0xff]  ;;  %s1693_s1 = sld [smem:[#allocation4 + $0x1]] }
 0x1d0   :  { %459 = vmatpush.bf16.msra.mxu2 %v383_v39  ;;  %v1822_v39 = vld [vmem:[%s2752_s5 + $0x20] sm:$0xff]  ;;  %v2224_v61 = vadd.f32 %v2217_v54, %v488_v49  ;;  %v491_v15 = vmul.f32 0.9, %v413_v26  ;;  %v492_v43 = vmul.f32 0.9, %v415_v29 }
 0x1d1   :  { %608 = vmatpush.bf16.msrb.mxu3 %v1824_v33  ;;  %v2251_v17 = vmul.f32 0.1, %v2125_v59  ;;  %v493_v33 = vmul.f32 0.9, %v418_v30  ;;  %v2265_v26 = vmul.f32 0.1, %v2149_v11 }
 0x1d2   :  { %v2268_v59 = vmul.f32 0.1, %v2161_v19  ;;  %v2279_v30 = vmul.f32 0.1, %v2083_v32  ;;  %v2282_v11 = vmul.f32 0.1, %v2095_v40 }
 0x1d3   :  { %s656_s15 = ssub.f32 1.0, %s486_s14  ;;  %v2296_v40 = vmul.f32 0.1, %v2119_v56 }
 0x1d4   :  { %460 = vmatpush.bf16.msra.mxu2 %v382_v46  ;;  %v1820_v46 = vld [vmem:[%s2752_s5 + $0x10] sm:$0xff] }
 0x1d5   :  { %609 = vmatpush.bf16.msrb.mxu3 %v1823_v37  ;;  %v494_v37 = vmul.f32 0.9, %v420_v31  ;;  %s1158_s2 = ssub.f32 1.0, %s1693_s1 }
 0x1d7   :  { %v2274_v29 = vadd.f32 %v2268_v59, %v494_v37 }
 0x1d8   :  { %461 = vmatpush.bf16.msra.mxu2 %v381_v53  ;;  %v2214_v53 = vmul.f32 0.1, %v2077_v27 }
 0x1d9   :  { %610 = vmatpush.bf16.msrb.mxu3 %v1822_v39 }
 0x1dc   :  { %462 = vmatpush.bf16.msra.mxu2 %v380_v57  ;;  %v519_v57 = vadd.f32 %v2214_v53, %v487_v47 }
 0x1dd   :  { %611 = vmatpush.bf16.msrb.mxu3 %v1821_v41 }
 0x1de   :  { %v535_v27 = vpack.c.bf16 %v2224_v61, %v519_v57 }
 0x1e0   :  { %463 = vmatpush.bf16.msra.mxu2 %v379_v63  ;;  %v489_v63 = vmul.f32 0.9, %v408_v21  ;;  %v2257_v21 = vadd.f32 %v2251_v17, %v491_v15 }
 0x1e1   :  { %612 = vmatpush.bf16.msrb.mxu3 %v1820_v46 }
 0x1e2   :  { %v2240_v7 = vadd.f32 %v2234_v5, %v489_v63 }
 0x1e4   :  { %464 = vmatpush.bf16.msra.mxu2 %v378_v6  ;;  %v2237_v6 = vmul.f32 0.1, %v2113_v51  ;;  %v2254_v51 = vmul.f32 0.1, %v2137_v3  ;;  %v2271_v3 = vadd.f32 %v2265_v26, %v493_v33  ;;  %v690_v33 = vunpack.c.l.bf16 %v2081_v28  ;;  %v2321_v28 = vld [vmem:[%s2754_s7] ss:$0 sm:$0xff] }
 0x1e5   :  { %613 = vmatpush.bf16.msrb.mxu3 %v1819_v55 }
 0x1e6   :  { %v2243_v9 = vadd.f32 %v2237_v6, %v490_v1  ;;  %v2260_v22 = vadd.f32 %v2254_v51, %v492_v43  ;;  %v538_v39 = vpack.c.bf16 %v2274_v29, %v2271_v3 }
 0x1e7   :  { %465 = vmatmul.bf16.vlgmr.msra.gmra.mxu2 %v2192_v38 }
 0x1e8   :  { %v536_v13 = vpack.c.bf16 %v2243_v9, %v2240_v7  ;;  %v537_v24 = vpack.c.bf16 %v2260_v22, %v2257_v21 }
 0x1e9   :  { %614 = vmatpush.bf16.msrb.mxu3 %v1818_v62 }
 0x1ec   :  { %615 = vmatmul.bf16.vlgmr.msrb.gmra.mxu3 %v535_v27  ;;  %v2293_v27 = vmul.f32 0.1, %v2107_v48 }
 0x1f7   :  { %470 = vmatmul.bf16.gmra.mxu2 %v2207_v45 }
 0x1fc   :  { %620 = vmatmul.bf16.gmra.mxu3 %v536_v13  ;;  %v2298_v13 = vstv %s656_s15 }
 0x207   :  { %475 = vmatmul.bf16.gmra.mxu2 %v2230_v35 }
 0x20c   :  { %625 = vmatmul.bf16.gmra.mxu3 %v537_v24  ;;  %v658_v24 = vmul.f32 %v2298_v13, %v519_v57 }
 0x217   :  { %480 = vmatmul.bf16.gmra.mxu2 %v2247_v14 }
 0x21c   :  { %630 = vmatmul.bf16.gmra.mxu3 %v538_v39  ;;  %v2313_v39 = vld [vmem:[%s2753_s6] ss:$0 sm:$0xff] }
 0x26a   :  { %v466_v41 = vpop.f32.mrf.mxu2 }
 0x26b   :  { %v495_v46 = vmul.f32 0.9, %v466_v41 }
 0x26d   :  { %v2285_v47 = vadd.f32 %v2279_v30, %v495_v46 }
 0x26f   :  { %v616_v37 = vpop.f32.mrf.mxu3 }
 0x270   :  { %v674_v56 = vadd.f32 %v658_v24, %v616_v37 }
 0x272   :  { %v468_v19 = vpop.f32.mrf.mxu2  ;;  %v706_v46 = vadd.f32 %v690_v33, %v674_v56  ;;  %v660_v56 = vmul.f32 %v2298_v13, %v2240_v7 }
 0x273   :  { %v496_v31 = vmul.f32 0.9, %v468_v19  ;;  %v659_v19 = vmul.f32 %v2298_v13, %v2224_v61 }
 0x274   :  { %v726_v57 = vmul.f32 %v2313_v39, %v706_v46  ;;  %v692_v46 = vunpack.c.l.bf16 %v2105_v44 }
 0x275   :  { %v2288_v49 = vadd.f32 %v2282_v11, %v496_v31  ;;  %v691_v31 = vunpack.c.l.bf16 %v2093_v36 }
 0x276   :  { %v746_v61 = vadd.f32 %v2321_v28, %v726_v57 }
 0x277   :  { %v539_v55 = vpack.c.bf16 %v2288_v49, %v2285_v47 }
 0x278   :  { %vm762_vm0 = vcmp.gt.f32.partialorder %v746_v61, 0.0 }
 0x279   :  { %635 = vmatmul.bf16.gmra.mxu3 %v539_v55  ;;  %v618_v55 = vpop.f32.mrf.mxu3 }
 0x27a   :  { %v471_v62 = vpop.f32.mrf.mxu2 }
 0x27b   :  { %v497_v32 = vmul.f32 0.9, %v471_v62  ;;  %v675_v62 = vadd.f32 %v659_v19, %v618_v55 }
 0x27d   :  { %v2301_v15 = vadd.f32 %v2293_v27, %v497_v32  ;;  %v707_v33 = vadd.f32 %v691_v31, %v675_v62 }
 0x27f   :  { %v727_v37 = vmul.f32 %v2313_v39, %v707_v33 }
 0x281   :  { %v621_v57 = vpop.f32.mrf.mxu3 }
 0x282   :  { %v473_v63 = vpop.f32.mrf.mxu2  ;;  %v676_v55 = vadd.f32 %v660_v56, %v621_v57 }
 0x283   :  { %v498_v1 = vmul.f32 0.9, %v473_v63  ;;  %v2325_v63 = vmul.f32 0.1, %v2131_v0  ;;  %v778_v0 = vmin.f32 %v746_v61, 0.0 }
 0x285   :  { %v2304_v43 = vadd.f32 %v2296_v40, %v498_v1  ;;  %2761 = vst [vmem:[#allocation11_spill] sm:$0xff] %v2325_v63  ;;  %v2328_v1 = vmul.f32 0.1, %v2143_v8  ;;  %v747_v8 = vadd.f32 %v2321_v28, %v727_v37  ;;  %v794_v62 = vmul.f32 1.442695, %v778_v0 }
 0x286   :  { %v693_v37 = vunpack.c.l.bf16 %v2117_v52 }
 0x287   :  { %v540_v48 = vpack.c.bf16 %v2304_v43, %v2301_v15  ;;  %2762 = vst [vmem:[#allocation12_spill] sm:$0xff] %v2328_v1  ;;  %v779_v31 = vmin.f32 %v747_v8, 0.0  ;;  %1861 = vpow2.f32 %v794_v62  ;;  %vm763_vm1 = vcmp.gt.f32.partialorder %v747_v8, 0.0 }
 0x289   :  { %640 = vmatmul.bf16.gmra.mxu3 %v540_v48  ;;  %v623_v44 = vpop.f32.mrf.mxu3 }
 0x28a   :  { %v476_v41 = vpop.f32.mrf.mxu2 }
 0x28b   :  { %v499_v32 = vmul.f32 0.9, %v476_v41 }
 0x28d   :  { %v2335_v36 = vadd.f32 %v2325_v63, %v499_v32  ;;  %v708_v32 = vadd.f32 %v692_v46, %v676_v55  ;;  %v2349_v63 = vmul.f32 0.1, %v2155_v16 }
 0x28f   :  { %v728_v33 = vmul.f32 %v2313_v39, %v708_v32 }
 0x291   :  { %v748_v56 = vadd.f32 %v2321_v28, %v728_v33 }
 0x292   :  { %v478_v24 = vpop.f32.mrf.mxu2 }
 0x293   :  { %v500_v48 = vmul.f32 0.9, %v478_v24  ;;  %v796_v24 = vmul.f32 1.442695, %v779_v31  ;;  %v1862_v31 = vpop.eup %1861  ;;  %vm764_vm2 = vcmp.gt.f32.partialorder %v748_v56, 0.0 }
 0x295   :  { %v2338_v41 = vadd.f32 %v2328_v1, %v500_v48  ;;  %v661_v48 = vmul.f32 %v2298_v13, %v2243_v9  ;;  %1863 = vpow2.f32 %v796_v24  ;;  %v662_v9 = vmul.f32 %v2298_v13, %v2257_v21 }
 0x296   :  { %v1661_v24 = vadd.f32 -1.0, %v1862_v31 }
 0x297   :  { %v541_v19 = vpack.c.bf16 %v2338_v41, %v2335_v36  ;;  %v677_v0 = vadd.f32 %v661_v48, %v623_v44  ;;  %v694_v48 = vunpack.c.l.bf16 %v2129_v60 }
 0x299   :  { %645 = vmatmul.bf16.gmra.mxu3 %v541_v19  ;;  %v2353_v19 = vmul.f32 0.1, %v2167_v23  ;;  %v709_v57 = vadd.f32 %v693_v37, %v677_v0  ;;  %v842_v37 = vsel %vm762_vm0, %v746_v61, %v1661_v24  ;;  %v663_v61 = vmul.f32 %v2298_v13, %v2260_v22 }
 0x29a   :  { %v481_v7 = vpop.f32.mrf.mxu2  ;;  %v2368_v0 = vpack.c.bf16 %v842_v37, %v842_v37  ;;  %v664_v22 = vmul.f32 %v2298_v13, %v2271_v3 }
 0x29b   :  { %v501_v1 = vmul.f32 0.9, %v481_v7  ;;  %2763 = vst [vmem:[#allocation13_spill] sm:$0xff] %v2353_v19  ;;  %v1864_v52 = vpop.eup %1863  ;;  %v780_v7 = vmin.f32 %v748_v56, 0.0  ;;  %v729_v16 = vmul.f32 %v2313_v39, %v709_v57 }
 0x29c   :  { %v1662_v23 = vadd.f32 -1.0, %v1864_v52  ;;  %v922_v52 = vunpack.c.l.b16 %v2368_v0 }
 0x29d   :  { %v2358_v62 = vadd.f32 %v2349_v63, %v501_v1  ;;  %v749_v33 = vadd.f32 %v2321_v28, %v729_v16  ;;  %v626_v1 = vpop.f32.mrf.mxu3 }
 0x29e   :  { %v843_v44 = vsel %vm763_vm1, %v747_v8, %v1662_v23  ;;  %v678_v57 = vadd.f32 %v662_v9, %v626_v1  ;;  %v695_v9 = vunpack.c.l.bf16 %v2141_v4 }
 0x29f   :  { %v2370_v31 = vpack.c.bf16 %v843_v44, %v843_v44  ;;  %vm765_vm3 = vcmp.gt.f32.partialorder %v749_v33, 0.0 }
 0x2a0   :  { %v710_v16 = vadd.f32 %v694_v48, %v678_v57 }
 0x2a1   :  { %v923_v60 = vunpack.c.l.b16 %v2370_v31 }
 0x2a2   :  { %v483_v46 = vpop.f32.mrf.mxu2  ;;  %v730_v8 = vmul.f32 %v2313_v39, %v710_v16 }
 0x2a3   :  { %v502_v55 = vmul.f32 0.9, %v483_v46  ;;  %v781_v46 = vmin.f32 %v749_v33, 0.0  ;;  %v2376_v24 = vpack.c.b16 %v923_v60, %v922_v52 }
 0x2a5   :  { %v2362_v32 = vadd.f32 %v2353_v19, %v502_v55  ;;  %v798_v55 = vmul.f32 1.442695, %v780_v7  ;;  %v800_v19 = vmul.f32 1.442695, %v781_v46  ;;  %v628_v23 = vpop.f32.mrf.mxu3  ;;  %v750_v7 = vadd.f32 %v2321_v28, %v730_v8 }
 0x2a6   :  { %v679_v37 = vadd.f32 %v663_v61, %v628_v23 }
 0x2a7   :  { %v542_v21 = vpack.c.bf16 %v2362_v32, %v2358_v62  ;;  %1865 = vpow2.f32 %v798_v55  ;;  %v782_v57 = vmin.f32 %v750_v7, 0.0  ;;  %vm766_vm4 = vcmp.gt.f32.partialorder %v750_v7, 0.0 }
 0x2a8   :  { %1867 = vpow2.f32 %v800_v19  ;;  %v696_v19 = vunpack.c.l.bf16 %v2153_v12 }
 0x2a9   :  { %650 = vmatmul.bf16.gmra.mxu3 %v542_v21  ;;  %v711_v21 = vadd.f32 %v695_v9, %v679_v37  ;;  %v802_v37 = vmul.f32 1.442695, %v782_v57 }
 0x2ab   :  { %v731_v44 = vmul.f32 %v2313_v39, %v711_v21  ;;  %1869 = vpow2.f32 %v802_v37 }
 0x2ad   :  { %v1866_v1 = vpop.eup %1865  ;;  %v751_v4 = vadd.f32 %v2321_v28, %v731_v44  ;;  %v631_v16 = vpop.f32.mrf.mxu3  ;;  %v665_v44 = vmul.f32 %v2298_v13, %v2274_v29 }
 0x2ae   :  { %v1868_v48 = vpop.eup %1867  ;;  %v1663_v46 = vadd.f32 -1.0, %v1866_v1  ;;  %v680_v9 = vadd.f32 %v664_v22, %v631_v16 }
 0x2af   :  { %v1664_v55 = vadd.f32 -1.0, %v1868_v48  ;;  %v783_v8 = vmin.f32 %v751_v4, 0.0  ;;  %vm767_vm5 = vcmp.gt.f32.partialorder %v751_v4, 0.0 }
 0x2b0   :  { %v844_v52 = vsel %vm764_vm2, %v748_v56, %v1663_v46  ;;  %v712_v1 = vadd.f32 %v696_v19, %v680_v9 }
 0x2b1   :  { %v845_v60 = vsel %vm765_vm3, %v749_v33, %v1664_v55  ;;  %v2386_v61 = vpack.c.bf16 %v844_v52, %v844_v52  ;;  %v804_v21 = vmul.f32 1.442695, %v783_v8  ;;  %v697_v33 = vunpack.c.l.bf16 %v2165_v20  ;;  %v1870_v52 = vpop.eup %1869 }
 0x2b2   :  { %v2388_v23 = vpack.c.bf16 %v845_v60, %v845_v60  ;;  %v732_v56 = vmul.f32 %v2313_v39, %v712_v1  ;;  %v1665_v60 = vadd.f32 -1.0, %v1870_v52 }
 0x2b3   :  { %v924_v3 = vunpack.c.l.b16 %v2386_v61  ;;  %1871 = vpow2.f32 %v804_v21 }
 0x2b4   :  { %v925_v48 = vunpack.c.l.b16 %v2388_v23  ;;  %v752_v57 = vadd.f32 %v2321_v28, %v732_v56  ;;  %v846_v37 = vsel %vm766_vm4, %v750_v7, %v1665_v60 }
 0x2b5   :  { %v633_v22 = vpop.f32.mrf.mxu3  ;;  %v2401_v20 = vpack.c.bf16 %v846_v37, %v846_v37 }
 0x2b6   :  { %v2394_v12 = vpack.c.b16 %v925_v48, %v924_v3  ;;  %v681_v46 = vadd.f32 %v665_v44, %v633_v22  ;;  %v784_v8 = vmin.f32 %v752_v57, 0.0  ;;  %vm768_vm6 = vcmp.gt.f32.partialorder %v752_v57, 0.0 }
 0x2b7   :  { %v926_v44 = vunpack.c.l.b16 %v2401_v20 }
 0x2b8   :  { %v713_v55 = vadd.f32 %v697_v33, %v681_v46  ;;  %v806_v48 = vmul.f32 1.442695, %v784_v8 }
 0x2b9   :  { %v1872_v19 = vpop.eup %1871 }
 0x2ba   :  { %v733_v16 = vmul.f32 %v2313_v39, %v713_v55  ;;  %v1666_v29 = vadd.f32 -1.0, %v1872_v19  ;;  %1873 = vpow2.f32 %v806_v48 }
 0x2bc   :  { %v753_v9 = vadd.f32 %v2321_v28, %v733_v16  ;;  %v847_v3 = vsel %vm767_vm5, %v751_v4, %v1666_v29 }
 0x2bd   :  { %v2403_v1 = vpack.c.bf16 %v847_v3, %v847_v3  ;;  %v666_v3 = vmul.f32 %v2298_v13, %v2285_v47 }
 0x2be   :  { %v785_v21 = vmin.f32 %v753_v9, 0.0  ;;  %vm769_vm7 = vcmp.gt.f32.partialorder %v753_v9, 0.0 }
 0x2bf   :  { %v927_v33 = vunpack.c.l.b16 %v2403_v1 }
 0x2c0   :  { %v808_v56 = vmul.f32 1.442695, %v785_v21  ;;  %v1874_v46 = vpop.eup %1873  ;;  %v698_v21 = vunpack.c.l.bf16 %v2087_v34 }
 0x2c1   :  { %v2407_v22 = vpack.c.b16 %v927_v33, %v926_v44  ;;  %v1667_v52 = vadd.f32 -1.0, %v1874_v46  ;;  %v667_v33 = vmul.f32 %v2298_v13, %v2288_v49  ;;  %v699_v46 = vunpack.c.l.bf16 %v2099_v42 }
 0x2c2   :  { %1875 = vpow2.f32 %v808_v56 }
 0x2c3   :  { %v848_v4 = vsel %vm768_vm6, %v752_v57, %v1667_v52 }
 0x2c4   :  { %v2409_v16 = vpack.c.bf16 %v848_v4, %v848_v4 }
 0x2c6   :  { %v928_v8 = vunpack.c.l.b16 %v2409_v16 }
 0x2c8   :  { %v1876_v55 = vpop.eup %1875 }
 0x2c9   :  { %v1668_v7 = vadd.f32 -1.0, %v1876_v55 }
 0x2cb   :  { %v849_v19 = vsel %vm769_vm7, %v753_v9, %v1668_v7 }
 0x2cc   :  { %v2411_v60 = vpack.c.bf16 %v849_v19, %v849_v19 }
 0x2ce   :  { %v929_v29 = vunpack.c.l.b16 %v2411_v60 }
 0x2d0   :  { %v2415_v37 = vpack.c.b16 %v929_v29, %v928_v8  ;;  %v668_v8 = vmul.f32 %v2298_v13, %v2301_v15  ;;  %v700_v29 = vunpack.c.l.bf16 %v2111_v50 }
 0x2fc   :  { %v636_v48 = vpop.f32.mrf.mxu3 }
 0x2fd   :  { %v682_v44 = vadd.f32 %v666_v3, %v636_v48 }
 0x2ff   :  { %v714_v56 = vadd.f32 %v698_v21, %v682_v44 }
 0x301   :  { %v734_v57 = vmul.f32 %v2313_v39, %v714_v56 }
 0x303   :  { %v754_v9 = vadd.f32 %v2321_v28, %v734_v57 }
 0x304   :  { %v638_v55 = vpop.f32.mrf.mxu3 }
 0x305   :  { %v786_v52 = vmin.f32 %v754_v9, 0.0  ;;  %v683_v7 = vadd.f32 %v667_v33, %v638_v55  ;;  %v701_v55 = vunpack.c.l.bf16 %v2123_v58  ;;  %vm770_vm8 = vcmp.gt.f32.partialorder %v754_v9, 0.0 }
 0x306   :  { %v670_v58 = vmul.f32 %v2298_v13, %v2335_v36 }
 0x307   :  { %v810_v4 = vmul.f32 1.442695, %v786_v52  ;;  %v715_v19 = vadd.f32 %v699_v46, %v683_v7  ;;  %v669_v46 = vmul.f32 %v2298_v13, %v2304_v43 }
 0x309   :  { %v735_v47 = vmul.f32 %v2313_v39, %v715_v19  ;;  %1877 = vpow2.f32 %v810_v4 }
 0x30b   :  { %v755_v34 = vadd.f32 %v2321_v28, %v735_v47 }
 0x30c   :  { %v641_v3 = vpop.f32.mrf.mxu3 }
 0x30d   :  { %v787_v21 = vmin.f32 %v755_v34, 0.0  ;;  %v684_v49 = vadd.f32 %v668_v8, %v641_v3  ;;  %vm771_vm9 = vcmp.gt.f32.partialorder %v755_v34, 0.0 }
 0x30f   :  { %v1878_v48 = vpop.eup %1877  ;;  %v812_v42 = vmul.f32 1.442695, %v787_v21  ;;  %v716_v44 = vadd.f32 %v700_v29, %v684_v49  ;;  %v702_v49 = vunpack.c.l.bf16 %v2135_v2 }
 0x310   :  { %v1669_v57 = vadd.f32 -1.0, %v1878_v48 }
 0x311   :  { %v736_v56 = vmul.f32 %v2313_v39, %v716_v44  ;;  %1879 = vpow2.f32 %v812_v42 }
 0x312   :  { %v850_v7 = vsel %vm770_vm8, %v754_v9, %v1669_v57 }
 0x313   :  { %v756_v33 = vadd.f32 %v2321_v28, %v736_v56  ;;  %v2436_v3 = vpack.c.bf16 %v850_v7, %v850_v7  ;;  %v703_v7 = vunpack.c.l.bf16 %v2147_v10  ;;  %v672_v10 = vmul.f32 %v2298_v13, %v2358_v62 }
 0x314   :  { %v643_v15 = vpop.f32.mrf.mxu3 }
 0x315   :  { %v788_v52 = vmin.f32 %v756_v33, 0.0  ;;  %v685_v50 = vadd.f32 %v669_v46, %v643_v15  ;;  %v930_v56 = vunpack.c.l.b16 %v2436_v3  ;;  %vm772_vm10 = vcmp.gt.f32.partialorder %v756_v33, 0.0 }
 0x317   :  { %v1880_v4 = vpop.eup %1879  ;;  %v814_v19 = vmul.f32 1.442695, %v788_v52  ;;  %v717_v47 = vadd.f32 %v701_v55, %v685_v50  ;;  %v671_v50 = vmul.f32 %v2298_v13, %v2338_v41 }
 0x318   :  { %v1670_v8 = vadd.f32 -1.0, %v1880_v4 }
 0x319   :  { %v737_v29 = vmul.f32 %v2313_v39, %v717_v47  ;;  %1881 = vpow2.f32 %v814_v19 }
 0x31a   :  { %v851_v21 = vsel %vm771_vm9, %v755_v34, %v1670_v8 }
 0x31b   :  { %v757_v43 = vadd.f32 %v2321_v28, %v737_v29  ;;  %v2442_v48 = vpack.c.bf16 %v851_v21, %v851_v21 }
 0x31c   :  { %v646_v9 = vpop.f32.mrf.mxu3 }
 0x31d   :  { %v789_v42 = vmin.f32 %v757_v43, 0.0  ;;  %v686_v44 = vadd.f32 %v670_v58, %v646_v9  ;;  %v931_v57 = vunpack.c.l.b16 %v2442_v48  ;;  %vm773_vm11 = vcmp.gt.f32.partialorder %v757_v43, 0.0 }
 0x31f   :  { %v1882_v46 = vpop.eup %1881  ;;  %v816_v55 = vmul.f32 1.442695, %v789_v42  ;;  %v718_v15 = vadd.f32 %v702_v49, %v686_v44  ;;  %v2446_v34 = vpack.c.b16 %v931_v57, %v930_v56  ;;  %v704_v56 = vunpack.c.l.bf16 %v2159_v18 }
 0x320   :  { %v1671_v36 = vadd.f32 -1.0, %v1882_v46  ;;  %v673_v18 = vmul.f32 %v2298_v13, %v2362_v32 }
 0x321   :  { %v738_v52 = vmul.f32 %v2313_v39, %v718_v15  ;;  %1883 = vpow2.f32 %v816_v55 }
 0x322   :  { %v852_v8 = vsel %vm772_vm10, %v756_v33, %v1671_v36 }
 0x323   :  { %v758_v2 = vadd.f32 %v2321_v28, %v738_v52  ;;  %v2454_v42 = vpack.c.bf16 %v852_v8, %v852_v8 }
 0x324   :  { %v648_v4 = vpop.f32.mrf.mxu3 }
 0x325   :  { %v790_v19 = vmin.f32 %v758_v2, 0.0  ;;  %v687_v47 = vadd.f32 %v671_v50, %v648_v4  ;;  %v932_v15 = vunpack.c.l.b16 %v2454_v42  ;;  %vm774_vm12 = vcmp.gt.f32.partialorder %v758_v2, 0.0 }
 0x327   :  { %v1884_v29 = vpop.eup %1883  ;;  %v818_v21 = vmul.f32 1.442695, %v790_v19  ;;  %v719_v58 = vadd.f32 %v703_v7, %v687_v47  ;;  %v705_v47 = vunpack.c.l.bf16 %v2171_v25 }
 0x328   :  { %v1672_v49 = vadd.f32 -1.0, %v1884_v29 }
 0x329   :  { %v739_v9 = vmul.f32 %v2313_v39, %v719_v58  ;;  %1885 = vpow2.f32 %v818_v21 }
 0x32a   :  { %v853_v44 = vsel %vm773_vm11, %v757_v43, %v1672_v49 }
 0x32b   :  { %v759_v41 = vadd.f32 %v2321_v28, %v739_v9  ;;  %v2460_v57 = vpack.c.bf16 %v853_v44, %v853_v44 }
 0x32c   :  { %v651_v33 = vpop.f32.mrf.mxu3 }
 0x32d   :  { %v791_v46 = vmin.f32 %v759_v41, 0.0  ;;  %v688_v55 = vadd.f32 %v672_v10, %v651_v33  ;;  %v933_v52 = vunpack.c.l.b16 %v2460_v57  ;;  %vm775_vm13 = vcmp.gt.f32.partialorder %v759_v41, 0.0 }
 0x32f   :  { %v1886_v36 = vpop.eup %1885  ;;  %v820_v50 = vmul.f32 1.442695, %v791_v46  ;;  %v720_v7 = vadd.f32 %v704_v56, %v688_v55  ;;  %v943_v43 = vpack.c.b16 %v933_v52, %v932_v15 }
 0x330   :  { %v1673_v19 = vadd.f32 -1.0, %v1886_v36 }
 0x331   :  { %v740_v4 = vmul.f32 %v2313_v39, %v720_v7  ;;  %1887 = vpow2.f32 %v820_v50 }
 0x332   :  { %v854_v58 = vsel %vm774_vm12, %v758_v2, %v1673_v19 }
 0x333   :  { %v760_v62 = vadd.f32 %v2321_v28, %v740_v4  ;;  %v2470_v33 = vpack.c.bf16 %v854_v58, %v854_v58  ;;  %v1832_v58 = vld [vmem:[%s2752_s5 + $0x50] sm:$0xff] }
 0x334   :  { %v653_v8 = vpop.f32.mrf.mxu3 }
 0x335   :  { %v792_v29 = vmin.f32 %v760_v62, 0.0  ;;  %v689_v21 = vadd.f32 %v673_v18, %v653_v8  ;;  %v934_v55 = vunpack.c.l.b16 %v2470_v33  ;;  %vm776_vm14 = vcmp.gt.f32.partialorder %v760_v62, 0.0 }
 0x337   :  { %v1888_v49 = vpop.eup %1887  ;;  %v721_v9 = vadd.f32 %v705_v47, %v689_v21  ;;  %v822_v44 = vmul.f32 1.442695, %v792_v29  ;;  %v1827_v29 = vld [vmem:[#allocation2] sm:$0xff]  ;;  %v1828_v21 = vld [vmem:[#allocation2 + $0x18] sm:$0xff] }
 0x338   :  { %v1674_v10 = vadd.f32 -1.0, %v1888_v49  ;;  %v1830_v49 = vld [vmem:[%s2752_s5 + $0x40] sm:$0xff] }
 0x339   :  { %v741_v56 = vmul.f32 %v2313_v39, %v721_v9  ;;  %1889 = vpow2.f32 %v822_v44 }
 0x33a   :  { %v855_v46 = vsel %vm775_vm13, %v759_v41, %v1674_v10 }
 0x33b   :  { %v761_v13 = vadd.f32 %v2321_v28, %v741_v56  ;;  %v2473_v32 = vpack.c.bf16 %v855_v46, %v855_v46 }
 0x33d   :  { %v793_v25 = vmin.f32 %v761_v13, 0.0  ;;  %v935_v2 = vunpack.c.l.b16 %v2473_v32  ;;  %vm777_vm15 = vcmp.gt.f32.partialorder %v761_v13, 0.0 }
 0x33f   :  { %v1890_v15 = vpop.eup %1889  ;;  %v824_v52 = vmul.f32 1.442695, %v793_v25  ;;  %v944_v36 = vpack.c.b16 %v935_v2, %v934_v55 }
 0x340   :  { %v1675_v50 = vadd.f32 -1.0, %v1890_v15 }
 0x341   :  { %1891 = vpow2.f32 %v824_v52 }
 0x342   :  { %v856_v39 = vsel %vm776_vm14, %v760_v62, %v1675_v50  ;;  %v1826_v62 = vld [vmem:[#allocation2 + $0x30] sm:$0xff] }
 0x343   :  { %v2477_v41 = vpack.c.bf16 %v856_v39, %v856_v39 }
 0x345   :  { %v936_v18 = vunpack.c.l.b16 %v2477_v41 }
 0x347   :  { %v1892_v7 = vpop.eup %1891 }
 0x348   :  { %v1676_v4 = vadd.f32 -1.0, %v1892_v7 }
 0x34a   :  { %v857_v28 = vsel %vm777_vm15, %v761_v13, %v1676_v4 }
 0x34b   :  { %v2479_v19 = vpack.c.bf16 %v857_v28, %v857_v28 }
 0x34d   :  { %v937_v47 = vunpack.c.l.b16 %v2479_v19 }
 0x34f   :  { %v945_v8 = vpack.c.b16 %v937_v47, %v936_v18 }
 0x351   :  { %954 = vmatpush.bf16.msrb.mxu1 %v945_v8 }
 0x355   :  { %955 = vmatpush.bf16.msrb.mxu1 %v944_v36 }
 0x359   :  { %956 = vmatpush.bf16.msrb.mxu1 %v943_v43  ;;  %v1837_v43 = vld [vmem:[%s2752_s5 + $0x78] sm:$0xff] }
 0x35a   :  { %1109 = vmatpush.bf16.msrb.mxu2 %v1837_v43 }
 0x35d   :  { %957 = vmatpush.bf16.msrb.mxu1 %v2446_v34  ;;  %v1829_v34 = vld [vmem:[#allocation2 + $0x10] sm:$0xff] }
 0x361   :  { %958 = vmatpush.bf16.msrb.mxu1 %v2415_v37  ;;  %v1833_v37 = vld [vmem:[%s2752_s5 + $0x58] sm:$0xff] }
 0x365   :  { %959 = vmatpush.bf16.msrb.mxu1 %v2407_v22  ;;  %v1836_v22 = vld [vmem:[%s2752_s5 + $0x70] sm:$0xff] }
 0x366   :  { %1110 = vmatpush.bf16.msrb.mxu2 %v1836_v22 }
 0x369   :  { %960 = vmatpush.bf16.msrb.mxu1 %v2394_v12  ;;  %v1834_v12 = vld [vmem:[%s2752_s5 + $0x60] sm:$0xff] }
 0x36d   :  { %961 = vmatpush.bf16.msrb.mxu1 %v2376_v24  ;;  %v1835_v24 = vld [vmem:[%s2752_s5 + $0x68] sm:$0xff] }
 0x36e   :  { %1111 = vmatpush.bf16.msrb.mxu2 %v1835_v24 }
 0x370   :  { %962 = vmatmul.bf16.vlgmr.msrb.gmra.mxu1 %v1826_v62 }
 0x372   :  { %1112 = vmatpush.bf16.msrb.mxu2 %v1834_v12 }
 0x376   :  { %1113 = vmatpush.bf16.msrb.mxu2 %v1833_v37 }
 0x37a   :  { %1114 = vmatpush.bf16.msrb.mxu2 %v1832_v58 }
 0x380   :  { %967 = vmatmul.bf16.gmra.mxu1 %v1827_v29 }
 0x390   :  { %972 = vmatmul.bf16.gmra.mxu1 %v1828_v21 }
 0x3a0   :  { %977 = vmatmul.bf16.gmra.mxu1 %v1829_v34 }
 0x3b0   :  { %982 = vmatmul.bf16.gmra.mxu1 %v2192_v38  ;;  %v1831_v38 = vld [vmem:[%s2752_s5 + $0x48] sm:$0xff] }
 0x3b1   :  { %1115 = vmatpush.bf16.msrb.mxu2 %v1831_v38 }
 0x3b5   :  { %1116 = vmatpush.bf16.msrb.mxu2 %v1830_v49 }
 0x3c0   :  { %987 = vmatmul.bf16.gmra.mxu1 %v2207_v45 }
 0x3d0   :  { %992 = vmatmul.bf16.gmra.mxu1 %v2230_v35 }
 0x3e0   :  { %997 = vmatmul.bf16.gmra.mxu1 %v2247_v14 }
 0x3ed   :  { %v963_v45 = vpop.f32.mrf.mxu1 }
 0x3ee   :  { %v1004_v9 = vmul.f32 0.9, %v963_v45 }
 0x3f0   :  { %v2517_v56 = vadd.f32 %v1004_v9, %v2214_v53  ;;  %v2764_v9 = vld [vmem:[#allocation11_spill] sm:$0xff] }
 0x3f5   :  { %v965_v44 = vpop.f32.mrf.mxu1 }
 0x3f6   :  { %v1005_v10 = vmul.f32 0.9, %v965_v44 }
 0x3f8   :  { %v2520_v46 = vadd.f32 %v1005_v10, %v2217_v54  ;;  %v2765_v10 = vld [vmem:[#allocation12_spill] sm:$0xff] }
 0x3fa   :  { %v1036_v35 = vpack.c.bf16 %v2520_v46, %v2517_v56 }
 0x3fc   :  { %1117 = vmatmul.bf16.vlgmr.msrb.gmra.mxu2 %v1036_v35 }
 0x3fd   :  { %v968_v13 = vpop.f32.mrf.mxu1 }
 0x3fe   :  { %v1006_v25 = vmul.f32 0.9, %v968_v13  ;;  %v1845_v13 = vld [vmem:[%s2755_s8 + $0x38] sm:$0xff] }
 0x3ff   :  { %1438 = vmatpush.bf16.msrb.mxu0 %v1845_v13 }
 0x400   :  { %v2525_v14 = vadd.f32 %v1006_v25, %v2234_v5 }
 0x405   :  { %v970_v55 = vpop.f32.mrf.mxu1 }
 0x406   :  { %v1007_v2 = vmul.f32 0.9, %v970_v55  ;;  %v1844_v55 = vld [vmem:[%s2755_s8 + $0x30] sm:$0xff] }
 0x407   :  { %1439 = vmatpush.bf16.msrb.mxu0 %v1844_v55 }
 0x408   :  { %v2528_v15 = vadd.f32 %v1007_v2, %v2237_v6 }
 0x40a   :  { %v1037_v53 = vpack.c.bf16 %v2528_v15, %v2525_v14 }
 0x40c   :  { %1122 = vmatmul.bf16.gmra.mxu2 %v1037_v53 }
 0x40d   :  { %v973_v54 = vpop.f32.mrf.mxu1 }
 0x40e   :  { %v1008_v52 = vmul.f32 0.9, %v973_v54 }
 0x410   :  { %v2533_v39 = vadd.f32 %v1008_v52, %v2251_v17  ;;  %v2766_v52 = vld [vmem:[#allocation13_spill] sm:$0xff] }
 0x415   :  { %v975_v36 = vpop.f32.mrf.mxu1 }
 0x416   :  { %v1009_v50 = vmul.f32 0.9, %v975_v36 }
 0x418   :  { %v2536_v7 = vadd.f32 %v1009_v50, %v2254_v51  ;;  %v1843_v50 = vld [vmem:[%s2755_s8 + $0x28] sm:$0xff] }
 0x419   :  { %1440 = vmatpush.bf16.msrb.mxu0 %v1843_v50 }
 0x41a   :  { %v1038_v5 = vpack.c.bf16 %v2536_v7, %v2533_v39 }
 0x41c   :  { %1127 = vmatmul.bf16.gmra.mxu2 %v1038_v5 }
 0x41d   :  { %v978_v6 = vpop.f32.mrf.mxu1 }
 0x41e   :  { %v1010_v4 = vmul.f32 0.9, %v978_v6  ;;  %v1842_v6 = vld [vmem:[%s2755_s8 + $0x20] sm:$0xff] }
 0x41f   :  { %1441 = vmatpush.bf16.msrb.mxu0 %v1842_v6 }
 0x420   :  { %v2541_v47 = vadd.f32 %v1010_v4, %v2265_v26  ;;  %v1840_v4 = vld [vmem:[%s2755_s8 + $0x10] sm:$0xff] }
 0x425   :  { %v980_v28 = vpop.f32.mrf.mxu1 }
 0x426   :  { %v1011_v18 = vmul.f32 0.9, %v980_v28  ;;  %v1839_v28 = vld [vmem:[%s2755_s8 + $0x8] sm:$0xff] }
 0x428   :  { %v2544_v8 = vadd.f32 %v1011_v18, %v2268_v59  ;;  %v2601_v18 = vstv %s1158_s2 }
 0x429   :  { %v1163_v50 = vmul.f32 %v2601_v18, %v2528_v15  ;;  %v1164_v15 = vmul.f32 %v2601_v18, %v2533_v39 }
 0x42a   :  { %v1039_v17 = vpack.c.bf16 %v2544_v8, %v2541_v47 }
 0x42c   :  { %1132 = vmatmul.bf16.gmra.mxu2 %v1039_v17  ;;  %v1838_v17 = vld [vmem:[%s2755_s8] sm:$0xff] }
 0x42d   :  { %v983_v51 = vpop.f32.mrf.mxu1 }
 0x42e   :  { %v1012_v62 = vmul.f32 0.9, %v983_v51  ;;  %v1160_v51 = vmul.f32 %v2601_v18, %v2517_v56 }
 0x430   :  { %v2549_v43 = vadd.f32 %v1012_v62, %v2279_v30 }
 0x435   :  { %v985_v29 = vpop.f32.mrf.mxu1 }
 0x436   :  { %v1013_v21 = vmul.f32 0.9, %v985_v29 }
 0x438   :  { %v2552_v34 = vadd.f32 %v1013_v21, %v2282_v11  ;;  %v1192_v21 = vunpack.c.l.bf16 %v2368_v0 }
 0x43a   :  { %v1040_v26 = vpack.c.bf16 %v2552_v34, %v2549_v43 }
 0x43c   :  { %1137 = vmatmul.bf16.gmra.mxu2 %v1040_v26  ;;  %v2612_v26 = vld [vmem:[%s2753_s6 + $0x1] ss:$0 sm:$0xff] }
 0x43d   :  { %v988_v59 = vpop.f32.mrf.mxu1 }
 0x43e   :  { %v1014_v22 = vmul.f32 0.9, %v988_v59 }
 0x440   :  { %v2557_v37 = vadd.f32 %v1014_v22, %v2293_v27  ;;  %v2617_v22 = vld [vmem:[%s2754_s7 + $0x1] ss:$0 sm:$0xff] }
 0x445   :  { %v990_v24 = vpop.f32.mrf.mxu1 }
 0x446   :  { %v1015_v12 = vmul.f32 0.9, %v990_v24 }
 0x448   :  { %v2560_v58 = vadd.f32 %v1015_v12, %v2296_v40  ;;  %v1161_v12 = vmul.f32 %v2601_v18, %v2520_v46 }
 0x44a   :  { %v1041_v30 = vpack.c.bf16 %v2560_v58, %v2557_v37 }
 0x44c   :  { %1142 = vmatmul.bf16.gmra.mxu2 %v1041_v30 }
 0x44d   :  { %v993_v11 = vpop.f32.mrf.mxu1 }
 0x44e   :  { %v1016_v38 = vmul.f32 0.9, %v993_v11  ;;  %v1193_v11 = vunpack.c.l.bf16 %v2370_v31 }
 0x450   :  { %v2565_v44 = vadd.f32 %v1016_v38, %v2764_v9 }
 0x455   :  { %v995_v49 = vpop.f32.mrf.mxu1 }
 0x456   :  { %v1017_v45 = vmul.f32 0.9, %v995_v49 }
 0x458   :  { %v2568_v35 = vadd.f32 %v1017_v45, %v2765_v10 }
 0x45a   :  { %v1042_v27 = vpack.c.bf16 %v2568_v35, %v2565_v44 }
 0x45c   :  { %1147 = vmatmul.bf16.gmra.mxu2 %v1042_v27  ;;  %v1162_v27 = vmul.f32 %v2601_v18, %v2525_v14  ;;  %v1195_v14 = vunpack.c.l.bf16 %v2388_v23 }
 0x45d   :  { %v998_v40 = vpop.f32.mrf.mxu1 }
 0x45e   :  { %v1018_v25 = vmul.f32 0.9, %v998_v40 }
 0x460   :  { %v2579_v54 = vadd.f32 %v1018_v25, %v2349_v63  ;;  %v1841_v63 = vld [vmem:[%s2755_s8 + $0x18] sm:$0xff]  ;;  %v1194_v25 = vunpack.c.l.bf16 %v2386_v61 }
 0x461   :  { %1442 = vmatpush.bf16.msrb.mxu0 %v1841_v63 }
 0x465   :  { %v1000_v2 = vpop.f32.mrf.mxu1  ;;  %1443 = vmatpush.bf16.msrb.mxu0 %v1840_v4 }
 0x466   :  { %v1019_v53 = vmul.f32 0.9, %v1000_v2 }
 0x468   :  { %v2582_v36 = vadd.f32 %v1019_v53, %v2766_v52 }
 0x469   :  { %1444 = vmatpush.bf16.msrb.mxu0 %v1839_v28 }
 0x46a   :  { %v1043_v5 = vpack.c.bf16 %v2582_v36, %v2579_v54 }
 0x46c   :  { %1152 = vmatmul.bf16.gmra.mxu2 %v1043_v5 }
 0x46d   :  { %1445 = vmatpush.bf16.msrb.mxu0 %v1838_v17 }
 0x47f   :  { %v1118_v62 = vpop.f32.mrf.mxu2 }
 0x480   :  { %v1176_v29 = vadd.f32 %v1160_v51, %v1118_v62 }
 0x482   :  { %v1208_v59 = vadd.f32 %v1192_v21, %v1176_v29 }
 0x484   :  { %v1229_v24 = vmul.f32 %v2612_v26, %v1208_v59 }
 0x486   :  { %v1250_v56 = vadd.f32 %v2617_v22, %v1229_v24 }
 0x487   :  { %v1120_v30 = vpop.f32.mrf.mxu2 }
 0x488   :  { %v1177_v0 = vadd.f32 %v1161_v12, %v1120_v30  ;;  %v1282_v38 = vmin.f32 %v1250_v56, 0.0  ;;  %vm1266_vm0 = vcmp.gt.f32.partialorder %v1250_v56, 0.0  ;;  %v1196_v30 = vunpack.c.l.bf16 %v2401_v20 }
 0x48a   :  { %v1209_v49 = vadd.f32 %v1193_v11, %v1177_v0  ;;  %v1298_v9 = vmul.f32 1.442695, %v1282_v38 }
 0x48c   :  { %v1230_v45 = vmul.f32 %v2612_v26, %v1209_v49  ;;  %1893 = vpow2.f32 %v1298_v9  ;;  %v1165_v9 = vmul.f32 %v2601_v18, %v2536_v7  ;;  %v1166_v7 = vmul.f32 %v2601_v18, %v2541_v47 }
 0x48e   :  { %v1251_v10 = vadd.f32 %v2617_v22, %v1230_v45 }
 0x48f   :  { %v1123_v40 = vpop.f32.mrf.mxu2 }
 0x490   :  { %v1178_v13 = vadd.f32 %v1162_v27, %v1123_v40  ;;  %v1283_v55 = vmin.f32 %v1251_v10, 0.0  ;;  %vm1267_vm1 = vcmp.gt.f32.partialorder %v1251_v10, 0.0  ;;  %v1197_v27 = vunpack.c.l.bf16 %v2403_v1 }
 0x492   :  { %v1210_v46 = vadd.f32 %v1194_v25, %v1178_v13  ;;  %v1300_v2 = vmul.f32 1.442695, %v1283_v55  ;;  %v1894_v53 = vpop.eup %1893 }
 0x493   :  { %v1744_v4 = vadd.f32 -1.0, %v1894_v53 }
 0x494   :  { %v1231_v31 = vmul.f32 %v2612_v26, %v1210_v46  ;;  %1895 = vpow2.f32 %v1300_v2 }
 0x495   :  { %v1346_v29 = vsel %vm1266_vm0, %v1250_v56, %v1744_v4 }
 0x496   :  { %v1252_v52 = vadd.f32 %v2617_v22, %v1231_v31 }
 0x497   :  { %v1125_v5 = vpop.f32.mrf.mxu2 }
 0x498   :  { %v1179_v6 = vadd.f32 %v1163_v50, %v1125_v5  ;;  %v1284_v63 = vmin.f32 %v1252_v52, 0.0  ;;  %vm1268_vm2 = vcmp.gt.f32.partialorder %v1252_v52, 0.0 }
 0x49a   :  { %v1896_v61 = vpop.eup %1895  ;;  %v1211_v28 = vadd.f32 %v1195_v14, %v1179_v6  ;;  %v1302_v62 = vmul.f32 1.442695, %v1284_v63  ;;  %v1198_v14 = vunpack.c.l.bf16 %v2409_v16 }
 0x49b   :  { %v1745_v17 = vadd.f32 -1.0, %v1896_v61 }
 0x49c   :  { %v1232_v51 = vmul.f32 %v2612_v26, %v1211_v28  ;;  %1897 = vpow2.f32 %v1302_v62 }
 0x49d   :  { %v1347_v21 = vsel %vm1267_vm1, %v1251_v10, %v1745_v17 }
 0x49e   :  { %v1253_v59 = vadd.f32 %v2617_v22, %v1232_v51  ;;  %v1362_v24 = vpack.c.bf16 %v1347_v21, %v1346_v29  ;;  %v1167_v51 = vmul.f32 %v2601_v18, %v2544_v8  ;;  %v1199_v29 = vunpack.c.l.bf16 %v2411_v60 }
 0x49f   :  { %v1128_v12 = vpop.f32.mrf.mxu2  ;;  %v1168_v8 = vmul.f32 %v2601_v18, %v2549_v43 }
 0x4a0   :  { %v1180_v23 = vadd.f32 %v1164_v15, %v1128_v12  ;;  %1446 = vmatmul.bf16.vlgmr.msrb.gmra.mxu0 %v1362_v24  ;;  %v1285_v0 = vmin.f32 %v1253_v59, 0.0  ;;  %vm1269_vm3 = vcmp.gt.f32.partialorder %v1253_v59, 0.0 }
 0x4a2   :  { %v1212_v11 = vadd.f32 %v1196_v30, %v1180_v23  ;;  %v1304_v38 = vmul.f32 1.442695, %v1285_v0  ;;  %v1898_v56 = vpop.eup %1897 }
 0x4a3   :  { %v1746_v20 = vadd.f32 -1.0, %v1898_v56  ;;  %v1200_v56 = vunpack.c.l.bf16 %v2436_v3 }
 0x4a4   :  { %v1233_v49 = vmul.f32 %v2612_v26, %v1212_v11  ;;  %1899 = vpow2.f32 %v1304_v38 }
 0x4a5   :  { %v1348_v31 = vsel %vm1268_vm2, %v1252_v52, %v1746_v20  ;;  %v1169_v20 = vmul.f32 %v2601_v18, %v2552_v34  ;;  %v1170_v34 = vmul.f32 %v2601_v18, %v2557_v37 }
 0x4a6   :  { %v1254_v45 = vadd.f32 %v2617_v22, %v1233_v49 }
 0x4a7   :  { %v1130_v39 = vpop.f32.mrf.mxu2 }
 0x4a8   :  { %v1181_v10 = vadd.f32 %v1165_v9, %v1130_v39  ;;  %v1286_v40 = vmin.f32 %v1254_v45, 0.0  ;;  %vm1270_vm4 = vcmp.gt.f32.partialorder %v1254_v45, 0.0 }
 0x4aa   :  { %v1900_v13 = vpop.eup %1899  ;;  %v1213_v25 = vadd.f32 %v1197_v27, %v1181_v10  ;;  %v1306_v2 = vmul.f32 1.442695, %v1286_v40 }
 0x4ab   :  { %v1747_v55 = vadd.f32 -1.0, %v1900_v13 }
 0x4ac   :  { %v1234_v46 = vmul.f32 %v2612_v26, %v1213_v25  ;;  %1901 = vpow2.f32 %v1306_v2  ;;  %v1201_v25 = vunpack.c.l.bf16 %v2442_v48 }
 0x4ad   :  { %v1349_v53 = vsel %vm1269_vm3, %v1253_v59, %v1747_v55 }
 0x4ae   :  { %v1255_v50 = vadd.f32 %v2617_v22, %v1234_v46  ;;  %v1363_v5 = vpack.c.bf16 %v1349_v53, %v1348_v31 }
 0x4af   :  { %v1133_v6 = vpop.f32.mrf.mxu2 }
 0x4b0   :  { %v1182_v1 = vadd.f32 %v1166_v7, %v1133_v6  ;;  %1451 = vmatmul.bf16.gmra.mxu0 %v1363_v5  ;;  %v1287_v63 = vmin.f32 %v1255_v50, 0.0  ;;  %vm1271_vm5 = vcmp.gt.f32.partialorder %v1255_v50, 0.0 }
 0x4b2   :  { %v1214_v4 = vadd.f32 %v1198_v14, %v1182_v1  ;;  %v1308_v61 = vmul.f32 1.442695, %v1287_v63  ;;  %v1902_v52 = vpop.eup %1901  ;;  %v1202_v63 = vunpack.c.l.bf16 %v2454_v42 }
 0x4b3   :  { %v1748_v16 = vadd.f32 -1.0, %v1902_v52 }
 0x4b4   :  { %v1235_v28 = vmul.f32 %v2612_v26, %v1214_v4  ;;  %1903 = vpow2.f32 %v1308_v61 }
 0x4b5   :  { %v1350_v30 = vsel %vm1270_vm4, %v1254_v45, %v1748_v16 }
 0x4b6   :  { %v1256_v17 = vadd.f32 %v2617_v22, %v1235_v28 }
 0x4b7   :  { %v1135_v47 = vpop.f32.mrf.mxu2 }
 0x4b8   :  { %v1183_v62 = vadd.f32 %v1167_v51, %v1135_v47  ;;  %v1288_v21 = vmin.f32 %v1256_v17, 0.0  ;;  %vm1272_vm6 = vcmp.gt.f32.partialorder %v1256_v17, 0.0  ;;  %v1171_v47 = vmul.f32 %v2601_v18, %v2560_v58 }
 0x4b9   :  { %v1172_v58 = vmul.f32 %v2601_v18, %v2565_v44 }
 0x4ba   :  { %v1904_v59 = vpop.eup %1903  ;;  %v1215_v15 = vadd.f32 %v1199_v29, %v1183_v62  ;;  %v1310_v23 = vmul.f32 1.442695, %v1288_v21  ;;  %v1203_v29 = vunpack.c.l.bf16 %v2460_v57 }
 0x4bb   :  { %v1749_v24 = vadd.f32 -1.0, %v1904_v59 }
 0x4bc   :  { %v1236_v12 = vmul.f32 %v2612_v26, %v1215_v15  ;;  %1905 = vpow2.f32 %v1310_v23 }
 0x4bd   :  { %v1351_v0 = vsel %vm1271_vm5, %v1255_v50, %v1749_v24 }
 0x4be   :  { %v1257_v11 = vadd.f32 %v2617_v22, %v1236_v12  ;;  %v1364_v38 = vpack.c.bf16 %v1351_v0, %v1350_v30 }
 0x4bf   :  { %v1138_v49 = vpop.f32.mrf.mxu2 }
 0x4c0   :  { %v1184_v60 = vadd.f32 %v1168_v8, %v1138_v49  ;;  %1456 = vmatmul.bf16.gmra.mxu0 %v1364_v38  ;;  %v1289_v9 = vmin.f32 %v1257_v11, 0.0  ;;  %vm1273_vm7 = vcmp.gt.f32.partialorder %v1257_v11, 0.0  ;;  %v1204_v38 = vunpack.c.l.bf16 %v2470_v33 }
 0x4c2   :  { %v1216_v39 = vadd.f32 %v1200_v56, %v1184_v60  ;;  %v1312_v10 = vmul.f32 1.442695, %v1289_v9  ;;  %v1906_v45 = vpop.eup %1905 }
 0x4c3   :  { %v1750_v3 = vadd.f32 -1.0, %v1906_v45 }
 0x4c4   :  { %v1237_v27 = vmul.f32 %v2612_v26, %v1216_v39  ;;  %1907 = vpow2.f32 %v1312_v10 }
 0x4c5   :  { %v1352_v7 = vsel %vm1272_vm6, %v1256_v17, %v1750_v3 }
 0x4c6   :  { %v1258_v40 = vadd.f32 %v2617_v22, %v1237_v27  ;;  %v1173_v27 = vmul.f32 %v2601_v18, %v2568_v35  ;;  %v1174_v35 = vmul.f32 %v2601_v18, %v2579_v54 }
 0x4c7   :  { %v1140_v43 = vpop.f32.mrf.mxu2 }
 0x4c8   :  { %v1185_v13 = vadd.f32 %v1169_v20, %v1140_v43  ;;  %v1290_v55 = vmin.f32 %v1258_v40, 0.0  ;;  %vm1274_vm8 = vcmp.gt.f32.partialorder %v1258_v40, 0.0 }
 0x4ca   :  { %v1908_v46 = vpop.eup %1907  ;;  %v1217_v2 = vadd.f32 %v1201_v25, %v1185_v13  ;;  %v1314_v50 = vmul.f32 1.442695, %v1290_v55 }
 0x4cb   :  { %v1751_v31 = vadd.f32 -1.0, %v1908_v46 }
 0x4cc   :  { %v1238_v53 = vmul.f32 %v2612_v26, %v1217_v2  ;;  %1909 = vpow2.f32 %v1314_v50 }
 0x4cd   :  { %v1353_v5 = vsel %vm1273_vm7, %v1257_v11, %v1751_v31 }
 0x4ce   :  { %v1259_v6 = vadd.f32 %v2617_v22, %v1238_v53  ;;  %v1365_v1 = vpack.c.bf16 %v1353_v5, %v1352_v7  ;;  %v1206_v7 = vunpack.c.l.bf16 %v2477_v41 }
 0x4cf   :  { %v1143_v14 = vpop.f32.mrf.mxu2 }
 0x4d0   :  { %v1186_v48 = vadd.f32 %v1170_v34, %v1143_v14  ;;  %1461 = vmatmul.bf16.gmra.mxu0 %v1365_v1  ;;  %v1291_v4 = vmin.f32 %v1259_v6, 0.0  ;;  %vm1275_vm9 = vcmp.gt.f32.partialorder %v1259_v6, 0.0 }
 0x4d2   :  { %v1218_v61 = vadd.f32 %v1202_v63, %v1186_v48  ;;  %v1316_v28 = vmul.f32 1.442695, %v1291_v4  ;;  %v1910_v17 = vpop.eup %1909  ;;  %v1175_v63 = vmul.f32 %v2601_v18, %v2582_v36 }
 0x4d3   :  { %v1752_v42 = vadd.f32 -1.0, %v1910_v17 }
 0x4d4   :  { %v1239_v52 = vmul.f32 %v2612_v26, %v1218_v61  ;;  %1911 = vpow2.f32 %v1316_v28  ;;  %v1207_v61 = vunpack.c.l.bf16 %v2479_v19 }
 0x4d5   :  { %v1354_v23 = vsel %vm1274_vm8, %v1258_v40, %v1752_v42  ;;  %v1205_v40 = vunpack.c.l.bf16 %v2473_v32 }
 0x4d6   :  { %v1260_v51 = vadd.f32 %v2617_v22, %v1239_v52 }
 0x4d7   :  { %v1145_v37 = vpop.f32.mrf.mxu2 }
 0x4d8   :  { %v1187_v62 = vadd.f32 %v1171_v47, %v1145_v37  ;;  %v1292_v21 = vmin.f32 %v1260_v51, 0.0  ;;  %vm1276_vm10 = vcmp.gt.f32.partialorder %v1260_v51, 0.0 }
 0x4da   :  { %v1912_v16 = vpop.eup %1911  ;;  %v1219_v59 = vadd.f32 %v1203_v29, %v1187_v62  ;;  %v1318_v12 = vmul.f32 1.442695, %v1292_v21 }
 0x4db   :  { %v1753_v15 = vadd.f32 -1.0, %v1912_v16 }
 0x4dc   :  { %v1240_v24 = vmul.f32 %v2612_v26, %v1219_v59  ;;  %1913 = vpow2.f32 %v1318_v12 }
 0x4dd   :  { %v1355_v30 = vsel %vm1275_vm9, %v1259_v6, %v1753_v15 }
 0x4de   :  { %v1261_v0 = vadd.f32 %v2617_v22, %v1240_v24  ;;  %v1366_v11 = vpack.c.bf16 %v1355_v30, %v1354_v23 }
 0x4df   :  { %v1148_v8 = vpop.f32.mrf.mxu2 }
 0x4e0   :  { %v1188_v57 = vadd.f32 %v1172_v58, %v1148_v8  ;;  %1466 = vmatmul.bf16.gmra.mxu0 %v1366_v11  ;;  %v1293_v49 = vmin.f32 %v1261_v0, 0.0  ;;  %vm1277_vm11 = vcmp.gt.f32.partialorder %v1261_v0, 0.0 }
 0x4e2   :  { %v1220_v60 = vadd.f32 %v1204_v38, %v1188_v57  ;;  %v1320_v56 = vmul.f32 1.442695, %v1293_v49  ;;  %v1914_v39 = vpop.eup %1913 }
 0x4e3   :  { %v1754_v33 = vadd.f32 -1.0, %v1914_v39 }
 0x4e4   :  { %v1241_v9 = vmul.f32 %v2612_v26, %v1220_v60  ;;  %1915 = vpow2.f32 %v1320_v56 }
 0x4e5   :  { %v1356_v46 = vsel %vm1276_vm10, %v1260_v51, %v1754_v33 }
 0x4e6   :  { %v1262_v10 = vadd.f32 %v2617_v22, %v1241_v9 }
 0x4e7   :  { %v1150_v44 = vpop.f32.mrf.mxu2 }
 0x4e8   :  { %v1189_v45 = vadd.f32 %v1173_v27, %v1150_v44  ;;  %v1294_v20 = vmin.f32 %v1262_v10, 0.0  ;;  %vm1278_vm12 = vcmp.gt.f32.partialorder %v1262_v10, 0.0 }
 0x4ea   :  { %v1916_v43 = vpop.eup %1915  ;;  %v1221_v13 = vadd.f32 %v1205_v40, %v1189_v45  ;;  %v1322_v3 = vmul.f32 1.442695, %v1294_v20 }
 0x4eb   :  { %v1755_v25 = vadd.f32 -1.0, %v1916_v43 }
 0x4ec   :  { %v1242_v55 = vmul.f32 %v2612_v26, %v1221_v13  ;;  %1917 = vpow2.f32 %v1322_v3 }
 0x4ed   :  { %v1357_v2 = vsel %vm1277_vm11, %v1261_v0, %v1755_v25 }
 0x4ee   :  { %v1263_v31 = vadd.f32 %v2617_v22, %v1242_v55  ;;  %v1367_v53 = vpack.c.bf16 %v1357_v2, %v1356_v46 }
 0x4ef   :  { %v1153_v50 = vpop.f32.mrf.mxu2 }
 0x4f0   :  { %v1190_v32 = vadd.f32 %v1174_v35, %v1153_v50  ;;  %1471 = vmatmul.bf16.gmra.mxu0 %v1367_v53  ;;  %v1295_v5 = vmin.f32 %v1263_v31, 0.0  ;;  %vm1279_vm13 = vcmp.gt.f32.partialorder %v1263_v31, 0.0 }
 0x4f2   :  { %v1222_v6 = vadd.f32 %v1206_v7, %v1190_v32  ;;  %v1324_v34 = vmul.f32 1.442695, %v1295_v5  ;;  %v1918_v14 = vpop.eup %1917 }
 0x4f3   :  { %v1756_v41 = vadd.f32 -1.0, %v1918_v14 }
 0x4f4   :  { %v1243_v1 = vmul.f32 %v2612_v26, %v1222_v6  ;;  %1919 = vpow2.f32 %v1324_v34 }
 0x4f5   :  { %v1358_v62 = vsel %vm1278_vm12, %v1262_v10, %v1756_v41 }
 0x4f6   :  { %v1264_v48 = vadd.f32 %v2617_v22, %v1243_v1 }
 0x4f7   :  { %v1155_v54 = vpop.f32.mrf.mxu2 }
 0x4f8   :  { %v1191_v4 = vadd.f32 %v1175_v63, %v1155_v54  ;;  %v1296_v28 = vmin.f32 %v1264_v48, 0.0  ;;  %vm1280_vm14 = vcmp.gt.f32.partialorder %v1264_v48, 0.0 }
 0x4fa   :  { %v1920_v52 = vpop.eup %1919  ;;  %v1223_v17 = vadd.f32 %v1207_v61, %v1191_v4  ;;  %v1326_v37 = vmul.f32 1.442695, %v1296_v28 }
 0x4fb   :  { %v1757_v51 = vadd.f32 -1.0, %v1920_v52 }
 0x4fc   :  { %v1244_v47 = vmul.f32 %v2612_v26, %v1223_v17  ;;  %1921 = vpow2.f32 %v1326_v37 }
 0x4fd   :  { %v1359_v29 = vsel %vm1279_vm13, %v1263_v31, %v1757_v51 }
 0x4fe   :  { %v1265_v21 = vadd.f32 %v2617_v22, %v1244_v47  ;;  %v1368_v42 = vpack.c.bf16 %v1359_v29, %v1358_v62  ;;  %v1860_v22 = vld [vmem:[%s2756_s9] ss:$0 sm:$0xff] }
 0x500   :  { %1476 = vmatmul.bf16.gmra.mxu0 %v1368_v42  ;;  %v1297_v36 = vmin.f32 %v1265_v21, 0.0  ;;  %vm1281_vm15 = vcmp.gt.f32.partialorder %v1265_v21, 0.0 }
 0x502   :  { %v1328_v18 = vmul.f32 1.442695, %v1297_v36  ;;  %v1922_v19 = vpop.eup %1921 }
 0x503   :  { %v1758_v16 = vadd.f32 -1.0, %v1922_v19 }
 0x504   :  { %1923 = vpow2.f32 %v1328_v18 }
 0x505   :  { %v1360_v26 = vsel %vm1280_vm14, %v1264_v48, %v1758_v16 }
 0x50a   :  { %v1924_v59 = vpop.eup %1923 }
 0x50b   :  { %v1759_v15 = vadd.f32 -1.0, %v1924_v59 }
 0x50d   :  { %v1361_v24 = vsel %vm1281_vm15, %v1265_v21, %v1759_v15 }
 0x50e   :  { %v1369_v12 = vpack.c.bf16 %v1361_v24, %v1360_v26 }
 0x510   :  { %1481 = vmatmul.bf16.gmra.mxu0 %v1369_v12 }
 0x51d   :  { %v1447_v23 = vpop.f32.mrf.mxu0 }
 0x51e   :  { %v1448_v30 = vadd.f32 %v1860_v22, %v1447_v23 }
 0x520   :  { %1487 = vst [vmem:[%s2757_s10] sm:$0xff] %v1448_v30 }
 0x525   :  { %v1449_v0 = vpop.f32.mrf.mxu0 }
 0x526   :  { %v1450_v58 = vadd.f32 %v1860_v22, %v1449_v0 }
 0x528   :  { %1488 = vst [vmem:[%s2757_s10 + $0x8] sm:$0xff] %v1450_v58 }
 0x52d   :  { %v1452_v11 = vpop.f32.mrf.mxu0 }
 0x52e   :  { %v1453_v8 = vadd.f32 %v1860_v22, %v1452_v11 }
 0x530   :  { %1489 = vst [vmem:[%s2757_s10 + $0x10] sm:$0xff] %v1453_v8 }
 0x535   :  { %v1454_v57 = vpop.f32.mrf.mxu0 }
 0x536   :  { %v1455_v38 = vadd.f32 %v1860_v22, %v1454_v57 }
 0x538   :  { %1490 = vst [vmem:[%s2757_s10 + $0x18] sm:$0xff] %v1455_v38 }
 0x53d   :  { %v1457_v49 = vpop.f32.mrf.mxu0 }
 0x53e   :  { %v1458_v60 = vadd.f32 %v1860_v22, %v1457_v49 }
 0x540   :  { %1491 = vst [vmem:[%s2757_s10 + $0x20] sm:$0xff] %v1458_v60 }
 0x545   :  { %v1459_v56 = vpop.f32.mrf.mxu0 }
 0x546   :  { %v1460_v9 = vadd.f32 %v1860_v22, %v1459_v56 }
 0x548   :  { %1492 = vst [vmem:[%s2757_s10 + $0x28] sm:$0xff] %v1460_v9 }
 0x54d   :  { %v1462_v39 = vpop.f32.mrf.mxu0 }
 0x54e   :  { %v1463_v10 = vadd.f32 %v1860_v22, %v1462_v39 }
 0x550   :  { %1493 = vst [vmem:[%s2757_s10 + $0x30] sm:$0xff] %v1463_v10 }
 0x555   :  { %v1464_v27 = vpop.f32.mrf.mxu0 }
 0x556   :  { %v1465_v44 = vadd.f32 %v1860_v22, %v1464_v27 }
 0x558   :  { %1494 = vst [vmem:[%s2757_s10 + $0x38] sm:$0xff] %v1465_v44 }
 0x55d   :  { %v1467_v45 = vpop.f32.mrf.mxu0 }
 0x55e   :  { %v1468_v40 = vadd.f32 %v1860_v22, %v1467_v45 }
 0x560   :  { %1495 = vst [vmem:[%s2757_s10 + $0x40] sm:$0xff] %v1468_v40 }
 0x565   :  { %v1469_v20 = vpop.f32.mrf.mxu0 }
 0x566   :  { %v1470_v33 = vadd.f32 %v1860_v22, %v1469_v20 }
 0x568   :  { %1496 = vst [vmem:[%s2757_s10 + $0x48] sm:$0xff] %v1470_v33 }
 0x56d   :  { %v1472_v43 = vpop.f32.mrf.mxu0 }
 0x56e   :  { %v1473_v13 = vadd.f32 %v1860_v22, %v1472_v43 }
 0x570   :  { %1497 = vst [vmem:[%s2757_s10 + $0x50] sm:$0xff] %v1473_v13 }
 0x575   :  { %v1474_v25 = vpop.f32.mrf.mxu0 }
 0x576   :  { %v1475_v55 = vadd.f32 %v1860_v22, %v1474_v25 }
 0x578   :  { %1498 = vst [vmem:[%s2757_s10 + $0x58] sm:$0xff] %v1475_v55 }
 0x57d   :  { %v1477_v3 = vpop.f32.mrf.mxu0 }
 0x57e   :  { %v1478_v46 = vadd.f32 %v1860_v22, %v1477_v3 }
 0x580   :  { %1499 = vst [vmem:[%s2757_s10 + $0x60] sm:$0xff] %v1478_v46 }
 0x585   :  { %v1479_v2 = vpop.f32.mrf.mxu0 }
 0x586   :  { %v1480_v31 = vadd.f32 %v1860_v22, %v1479_v2 }
 0x588   :  { %1500 = vst [vmem:[%s2757_s10 + $0x68] sm:$0xff] %v1480_v31 }
 0x58d   :  { %v1482_v35 = vpop.f32.mrf.mxu0 }
 0x58e   :  { %v1483_v53 = vadd.f32 %v1860_v22, %v1482_v35 }
 0x590   :  { %1501 = vst [vmem:[%s2757_s10 + $0x70] sm:$0xff] %v1483_v53 }
 0x595   :  { %v1484_v50 = vpop.f32.mrf.mxu0 }
 0x596   :  { %v1485_v32 = vadd.f32 %v1860_v22, %v1484_v50 }
 0x598   :  { %1502 = vst [vmem:[%s2757_s10 + $0x78] sm:$0xff] %v1485_v32 }
 0x599   :  { %1507 = vsyncpa [#allocation5], 1 }
 0x59a   :  { %1508 = vsyncmov [#allocation3] }
 0x59d   :  { %s1509_s29 = vpop.sfrf %1508 }
 0x59e   :  { %p1792_p0 = scmp.ne.s32.totalorder %s1509_s29, 0 }
 0x5a0   :  { %1513 = shalt.err (%p1792_p0)  }
 0x5a1   :  { %1515 = vsyncmov [#allocation3 + $0x1] }
 0x5a4   :  { %s1516_s30 = vpop.sfrf %1515 }
 0x5a5   :  { %p1793_p1 = scmp.ne.s32.totalorder %s1516_s30, 0 }
 0x5a7   :  { %1520 = shalt.err (%p1793_p1)  }

</bundles_post_ra>
